<compile_context>
chip_gen: v5e
topology: v5e:2x2
jax: 0.10.0
libtpu: 0.0.40
codegen_flags: <defaults>
</compile_context>

<pallas_src>
import jax
import jax.numpy as jnp
from jax.experimental import pallas as pl
from jax.experimental.pallas import tpu as pltpu


_VMEM_LIMIT = 32 * 1024 * 1024  # safe on v5e/v6e/v7x; blocks here are tiny


# ----------------------- fused conv+ReLU+pool kernel ------------------------

def _make_conv_relu_pool_kernel(Ho, Wo, Cin, Cout):
    """conv3x3(pad=1) + bias + ReLU + maxpool2x2, one image per grid step.

    VMEM blocks seen by the kernel:
      xs_ref: (4, Ho+1, (Wo+1)*Cin)  space-to-depth (factor 2) of the zero-
              padded NHWC image; row ra*2+rb holds pixels whose (row%2, col%2)
              parity is (ra, rb), channels flattened into the lane dim (bf16).
      w_ref : (9, Wo*Cin, Wo*Cout)   per-tap block-diagonal weights (bf16).
      b_ref : (1, Wo*Cout)           bias tiled per output column (f32).
      o_ref : (1, Ho, Wo*Cout)       pooled ReLU(conv) output (f32).
    """

    def kernel(xs_ref, w_ref, b_ref, o_ref):
        bias = b_ref[...]                                   # (1, Wo*Cout) f32

        # The 16 distinct shifted sub-grids of the padded image, loaded once.
        # Key: (row parity, row offset, col parity, col offset).
        patches = {}
        for ra in range(2):
            for rb in range(2):
                for oi in range(2):
                    for oj in range(2):
                        patches[(ra, oi, rb, oj)] = xs_ref[
                            ra * 2 + rb,
                            oi:oi + Ho,
                            oj * Cin:(oj + Wo) * Cin,
                        ]                                    # (Ho, Wo*Cin)

        pooled = None
        for pa in range(2):          # pooling-window row phase
            for pb in range(2):      # pooling-window col phase
                acc = jnp.zeros((Ho, Wo * Cout), jnp.float32)
                for di in range(3):
                    for dj in range(3):
                        ra, oi = (pa + di) % 2, (pa + di) // 2
                        rb, oj = (pb + dj) % 2, (pb + dj) // 2
                        acc = acc + jnp.dot(
                            patches[(ra, oi, rb, oj)],       # bf16
                            w_ref[di * 3 + dj],              # bf16
                            preferred_element_type=jnp.float32,
                        )
                y = jnp.maximum(acc + bias, 0.0)             # bias + ReLU (f32)
                pooled = y if pooled is None else jnp.maximum(pooled, y)

        o_ref[0] = pooled.astype(o_ref.dtype)

    return kernel


def _space_to_depth_pad(x):
    """(N, H, W, C) f32 NHWC, H/W even -> (N*4, H/2+1, (W/2+1)*C) bf16."""
    n, h, w, c = x.shape
    xp = jnp.pad(x, ((0, 0), (1, 1), (1, 1), (0, 0)))
    hs, ws = (h + 2) // 2, (w + 2) // 2
    xs = xp.reshape(n, hs, 2, ws, 2, c).transpose(0, 2, 4, 1, 3, 5)
    return xs.reshape(n * 4, hs, ws * c).astype(jnp.bfloat16)


def conv3x3_relu_pool(x, w_bd, b_t):
    """Fused PyTorch Conv2d(k=3, pad=1) + ReLU + F.max_pool2d(2).

    x   : (N, H, W, Cin) f32 NHWC (H, W even).
    w_bd: (9, Wo*Cin, Wo*Cout) bf16 block-diagonal per-tap weights.
    b_t : (1, Wo*Cout) f32 tiled bias.
    returns (N, H//2, W//2, Cout) f32.
    """
    n, h, w, cin = x.shape
    # TODO(synk): fused pooling assumes even H/W (true for this architecture);
    #             odd sizes would need PyTorch's floor-mode edge handling.
    assert h % 2 == 0 and w % 2 == 0
    ho, wo = h // 2, w // 2
    hs, ws = ho + 1, wo + 1
    assert w_bd.shape[1] == wo * cin
    cout = w_bd.shape[2] // wo

    xs = _space_to_depth_pad(x)                       # (N*4, hs, ws*cin) bf16

    out = pl.pallas_call(
        _make_conv_relu_pool_kernel(ho, wo, cin, cout),
        out_shape=jax.ShapeDtypeStruct((n, ho, wo * cout), jnp.float32),
        grid=(n,),
        in_specs=[
            pl.BlockSpec((4, hs, ws * cin), lambda i: (i, 0, 0)),
            pl.BlockSpec((9, wo * cin, wo * cout), lambda i: (0, 0, 0)),
            pl.BlockSpec((1, wo * cout), lambda i: (0, 0)),
        ],
        out_specs=pl.BlockSpec((1, ho, wo * cout), lambda i: (i, 0, 0)),
        compiler_params=pltpu.CompilerParams(
            dimension_semantics=("parallel",),
            vmem_limit_bytes=_VMEM_LIMIT),
    )(xs, w_bd, b_t)

    return out.reshape(n, ho, wo, cout)


# --------------------------- fused MLP head kernel ---------------------------

def _mlp_kernel(x_ref, w1_ref, b1_ref, w2_ref, b2_ref, o_ref):
    h = jnp.dot(x_ref[...], w1_ref[...], preferred_element_type=jnp.float32)
    h = jnp.maximum(h + b1_ref[...], 0.0)
    o = jnp.dot(h, w2_ref[...], preferred_element_type=jnp.float32)
    o_ref[...] = (o + b2_ref[...]).astype(o_ref.dtype)


def mlp_head(x, w1, b1, w2, b2):
    """logits = relu(x @ w1 + b1) @ w2 + b2 in a single pallas_call, tiled
    over M (rows) with a parallel grid axis."""
    m, k = x.shape
    hdim = w1.shape[1]
    odim = w2.shape[1]
    tile_m = min(128, ((m + 7) // 8) * 8)
    return pl.pallas_call(
        _mlp_kernel,
        out_shape=jax.ShapeDtypeStruct((m, odim), jnp.float32),
        grid=(pl.cdiv(m, tile_m),),
        in_specs=[
            pl.BlockSpec((tile_m, k), lambda i: (i, 0)),
            pl.BlockSpec((k, hdim), lambda i: (0, 0)),
            pl.BlockSpec((1, hdim), lambda i: (0, 0)),
            pl.BlockSpec((hdim, odim), lambda i: (0, 0)),
            pl.BlockSpec((1, odim), lambda i: (0, 0)),
        ],
        out_specs=pl.BlockSpec((tile_m, odim), lambda i: (i, 0)),
        compiler_params=pltpu.CompilerParams(
            dimension_semantics=("parallel",),
            vmem_limit_bytes=_VMEM_LIMIT),
    )(x, w1, b1, w2, b2)


# ------------------------------ params / glue --------------------------------

def _pack_conv_params(w_torch, bias, wo):
    """(Cout,Cin,3,3) PyTorch weight -> kernel-ready packed weights.

    Returns:
      w_bd: (9, wo*Cin, wo*Cout) bf16, block-diagonal per tap k = di*3 + dj:
            w_bd[k, j*Cin+ci, j*Cout+co] = w_torch[co, ci, di, dj].
      b_t : (1, wo*Cout) f32, bias tiled per output column.
    """
    cout, cin = w_torch.shape[0], w_torch.shape[1]
    w9 = jnp.transpose(w_torch, (2, 3, 1, 0)).reshape(9, cin, cout)
    eye = jnp.eye(wo, dtype=jnp.float32)
    w_bd = (eye[None, :, None, :, None] * w9[:, None, :, None, :]).reshape(
        9, wo * cin, wo * cout)
    b_t = jnp.tile(bias, wo).reshape(1, wo * cout)
    return w_bd.astype(jnp.bfloat16), b_t.astype(jnp.float32)


def init_params(key, c_in, h, w, num_classes=10):
    """Stand-in init (PyTorch-style U(-1/sqrt(fan_in), 1/sqrt(fan_in)));
    weights are packed once here into the layouts the kernels consume."""
    ks = jax.random.split(key, 8)

    def uni(kk, shape, fan_in):
        bound = 1.0 / jnp.sqrt(float(fan_in))
        return jax.random.uniform(kk, shape, jnp.float32, -bound, bound)

    c1, c2, hidden = 8, 16, 32
    wo1, wo2 = w // 2, w // 4
    feat = (h // 4) * (w // 4) * c2            # NHWC flatten order

    conv1_w = uni(ks[0], (c1, c_in, 3, 3), c_in * 9)
    conv1_b = uni(ks[1], (c1,), c_in * 9)
    conv2_w = uni(ks[2], (c2, c1, 3, 3), c1 * 9)
    conv2_b = uni(ks[3], (c2,), c1 * 9)
    w1_bd, b1_t = _pack_conv_params(conv1_w, conv1_b, wo1)
    w2_bd, b2_t = _pack_conv_params(conv2_w, conv2_b, wo2)

    return {
        "conv1_wbd": w1_bd, "conv1_bt": b1_t,
        "conv2_wbd": w2_bd, "conv2_bt": b2_t,
        "fc1_w": uni(ks[4], (feat, hidden), feat),          # stored (in, out)
        "fc1_b": uni(ks[5], (1, hidden), feat),
        "fc2_w": uni(ks[6], (hidden, num_classes), hidden),
        "fc2_b": uni(ks[7], (1, num_classes), hidden),
    }


def cnn_forward(params, x):
    """x: (N, C, H, W) f32 (PyTorch NCHW) -> logits (N, num_classes) f32."""
    y = jnp.transpose(x, (0, 2, 3, 1))          # single NCHW->NHWC conversion
    y = conv3x3_relu_pool(y, params["conv1_wbd"], params["conv1_bt"])
    y = conv3x3_relu_pool(y, params["conv2_wbd"], params["conv2_bt"])
    y = y.reshape(y.shape[0], -1)               # channels-last flatten
    return mlp_head(y, params["fc1_w"], params["fc1_b"],
                    params["fc2_w"], params["fc2_b"])


if __name__ == "__main__":
    key = jax.random.PRNGKey(0)
    k_x, k_p = jax.random.split(key)
    x = jax.random.normal(k_x, (2, 4, 16, 16), jnp.float32)   # NCHW input
    params = init_params(k_p, c_in=4, h=16, w=16, num_classes=10)

    logits = jax.jit(cnn_forward)(params, x)
    jax.block_until_ready(logits)
    assert logits.shape == (2, 10) and logits.dtype == jnp.float32
    print("KERNEL_OK")
</pallas_src>

<mosaic_0001>
module attributes {stable_mosaic.version = 11 : i64} {
  func.func @kernel(%arg0: i32, %arg1: memref<4x9x36xbf16, #tpu.memory_space<vmem>>, %arg2: memref<9x32x64xbf16, #tpu.memory_space<vmem>>, %arg3: memref<1x64xf32, #tpu.memory_space<vmem>>, %arg4: memref<1x8x64xf32, #tpu.memory_space<vmem>>) attributes {dimension_semantics = [#tpu.dimension_semantics<parallel>], iteration_bounds = array<i64: 2>, scalar_prefetch = 0 : i64, scratch_operands = 0 : i64, tpu.core_type = #tpu.core_type<tc>, window_params = [{transform_indices = @transform_0, window_bounds = array<i64: 4, 9, 36>}, {pipeline_mode = #tpu.pipeline_mode<synchronous>, transform_indices = @transform_1, window_bounds = array<i64: 9, 32, 64>}, {pipeline_mode = #tpu.pipeline_mode<synchronous>, transform_indices = @transform_2, window_bounds = array<i64: 1, 64>}, {transform_indices = @transform_3, window_bounds = array<i64: 1, 8, 64>}]} {
    %c0 = arith.constant 0 : index
    %c0_0 = arith.constant 0 : index
    %0 = vector.load %arg3[%c0, %c0_0] : memref<1x64xf32, #tpu.memory_space<vmem>>, vector<1x64xf32>
    %c0_1 = arith.constant 0 : index
    %c0_2 = arith.constant 0 : index
    %c0_3 = arith.constant 0 : index
    %1 = vector.load %arg1[%c0_1, %c0_2, %c0_3] : memref<4x9x36xbf16, #tpu.memory_space<vmem>>, vector<1x8x32xbf16>
    %2 = vector.shape_cast %1 : vector<1x8x32xbf16> to vector<8x32xbf16>
    %c0_4 = arith.constant 0 : index
    %c0_5 = arith.constant 0 : index
    %c4 = arith.constant 4 : index
    %3 = vector.load %arg1[%c0_4, %c0_5, %c4] : memref<4x9x36xbf16, #tpu.memory_space<vmem>>, vector<1x8x32xbf16>
    %4 = vector.shape_cast %3 : vector<1x8x32xbf16> to vector<8x32xbf16>
    %c0_6 = arith.constant 0 : index
    %c1 = arith.constant 1 : index
    %c0_7 = arith.constant 0 : index
    %5 = vector.load %arg1[%c0_6, %c1, %c0_7] : memref<4x9x36xbf16, #tpu.memory_space<vmem>>, vector<1x8x32xbf16>
    %6 = vector.shape_cast %5 : vector<1x8x32xbf16> to vector<8x32xbf16>
    %c0_8 = arith.constant 0 : index
    %c1_9 = arith.constant 1 : index
    %c4_10 = arith.constant 4 : index
    %7 = vector.load %arg1[%c0_8, %c1_9, %c4_10] : memref<4x9x36xbf16, #tpu.memory_space<vmem>>, vector<1x8x32xbf16>
    %8 = vector.shape_cast %7 : vector<1x8x32xbf16> to vector<8x32xbf16>
    %c1_11 = arith.constant 1 : index
    %c0_12 = arith.constant 0 : index
    %c0_13 = arith.constant 0 : index
    %9 = vector.load %arg1[%c1_11, %c0_12, %c0_13] : memref<4x9x36xbf16, #tpu.memory_space<vmem>>, vector<1x8x32xbf16>
    %10 = vector.shape_cast %9 : vector<1x8x32xbf16> to vector<8x32xbf16>
    %c1_14 = arith.constant 1 : index
    %c0_15 = arith.constant 0 : index
    %c4_16 = arith.constant 4 : index
    %11 = vector.load %arg1[%c1_14, %c0_15, %c4_16] : memref<4x9x36xbf16, #tpu.memory_space<vmem>>, vector<1x8x32xbf16>
    %12 = vector.shape_cast %11 : vector<1x8x32xbf16> to vector<8x32xbf16>
    %c1_17 = arith.constant 1 : index
    %c1_18 = arith.constant 1 : index
    %c0_19 = arith.constant 0 : index
    %13 = vector.load %arg1[%c1_17, %c1_18, %c0_19] : memref<4x9x36xbf16, #tpu.memory_space<vmem>>, vector<1x8x32xbf16>
    %14 = vector.shape_cast %13 : vector<1x8x32xbf16> to vector<8x32xbf16>
    %c1_20 = arith.constant 1 : index
    %c1_21 = arith.constant 1 : index
    %c4_22 = arith.constant 4 : index
    %15 = vector.load %arg1[%c1_20, %c1_21, %c4_22] : memref<4x9x36xbf16, #tpu.memory_space<vmem>>, vector<1x8x32xbf16>
    %16 = vector.shape_cast %15 : vector<1x8x32xbf16> to vector<8x32xbf16>
    %c2 = arith.constant 2 : index
    %c0_23 = arith.constant 0 : index
    %c0_24 = arith.constant 0 : index
    %17 = vector.load %arg1[%c2, %c0_23, %c0_24] : memref<4x9x36xbf16, #tpu.memory_space<vmem>>, vector<1x8x32xbf16>
    %18 = vector.shape_cast %17 : vector<1x8x32xbf16> to vector<8x32xbf16>
    %c2_25 = arith.constant 2 : index
    %c0_26 = arith.constant 0 : index
    %c4_27 = arith.constant 4 : index
    %19 = vector.load %arg1[%c2_25, %c0_26, %c4_27] : memref<4x9x36xbf16, #tpu.memory_space<vmem>>, vector<1x8x32xbf16>
    %20 = vector.shape_cast %19 : vector<1x8x32xbf16> to vector<8x32xbf16>
    %c2_28 = arith.constant 2 : index
    %c1_29 = arith.constant 1 : index
    %c0_30 = arith.constant 0 : index
    %21 = vector.load %arg1[%c2_28, %c1_29, %c0_30] : memref<4x9x36xbf16, #tpu.memory_space<vmem>>, vector<1x8x32xbf16>
    %22 = vector.shape_cast %21 : vector<1x8x32xbf16> to vector<8x32xbf16>
    %c2_31 = arith.constant 2 : index
    %c1_32 = arith.constant 1 : index
    %c4_33 = arith.constant 4 : index
    %23 = vector.load %arg1[%c2_31, %c1_32, %c4_33] : memref<4x9x36xbf16, #tpu.memory_space<vmem>>, vector<1x8x32xbf16>
    %24 = vector.shape_cast %23 : vector<1x8x32xbf16> to vector<8x32xbf16>
    %c3 = arith.constant 3 : index
    %c0_34 = arith.constant 0 : index
    %c0_35 = arith.constant 0 : index
    %25 = vector.load %arg1[%c3, %c0_34, %c0_35] : memref<4x9x36xbf16, #tpu.memory_space<vmem>>, vector<1x8x32xbf16>
    %26 = vector.shape_cast %25 : vector<1x8x32xbf16> to vector<8x32xbf16>
    %c3_36 = arith.constant 3 : index
    %c0_37 = arith.constant 0 : index
    %c4_38 = arith.constant 4 : index
    %27 = vector.load %arg1[%c3_36, %c0_37, %c4_38] : memref<4x9x36xbf16, #tpu.memory_space<vmem>>, vector<1x8x32xbf16>
    %28 = vector.shape_cast %27 : vector<1x8x32xbf16> to vector<8x32xbf16>
    %c3_39 = arith.constant 3 : index
    %c1_40 = arith.constant 1 : index
    %c0_41 = arith.constant 0 : index
    %29 = vector.load %arg1[%c3_39, %c1_40, %c0_41] : memref<4x9x36xbf16, #tpu.memory_space<vmem>>, vector<1x8x32xbf16>
    %30 = vector.shape_cast %29 : vector<1x8x32xbf16> to vector<8x32xbf16>
    %c3_42 = arith.constant 3 : index
    %c1_43 = arith.constant 1 : index
    %c4_44 = arith.constant 4 : index
    %31 = vector.load %arg1[%c3_42, %c1_43, %c4_44] : memref<4x9x36xbf16, #tpu.memory_space<vmem>>, vector<1x8x32xbf16>
    %32 = vector.shape_cast %31 : vector<1x8x32xbf16> to vector<8x32xbf16>
    %cst = arith.constant 0.000000e+00 : f32
    %33 = vector.broadcast %cst : f32 to vector<8x64xf32>
    %c0_45 = arith.constant 0 : index
    %c0_46 = arith.constant 0 : index
    %c0_47 = arith.constant 0 : index
    %34 = vector.load %arg2[%c0_45, %c0_46, %c0_47] : memref<9x32x64xbf16, #tpu.memory_space<vmem>>, vector<1x32x64xbf16>
    %35 = vector.shape_cast %34 : vector<1x32x64xbf16> to vector<32x64xbf16>
    %cst_48 = arith.constant dense<0.000000e+00> : vector<8x64xf32>
    %36 = tpu.matmul %2, %35, %cst_48 {dimension_numbers = #tpu.dot_dimension_numbers<[1], [0], [0], [1], [0, 0, 1, 1], [], []>} : vector<8x32xbf16>, vector<32x64xbf16>, vector<8x64xf32> -> vector<8x64xf32>
    %37 = arith.addf %33, %36 : vector<8x64xf32>
    %c1_49 = arith.constant 1 : index
    %c0_50 = arith.constant 0 : index
    %c0_51 = arith.constant 0 : index
    %38 = vector.load %arg2[%c1_49, %c0_50, %c0_51] : memref<9x32x64xbf16, #tpu.memory_space<vmem>>, vector<1x32x64xbf16>
    %39 = vector.shape_cast %38 : vector<1x32x64xbf16> to vector<32x64xbf16>
    %cst_52 = arith.constant dense<0.000000e+00> : vector<8x64xf32>
    %40 = tpu.matmul %10, %39, %cst_52 {dimension_numbers = #tpu.dot_dimension_numbers<[1], [0], [0], [1], [0, 0, 1, 1], [], []>} : vector<8x32xbf16>, vector<32x64xbf16>, vector<8x64xf32> -> vector<8x64xf32>
    %41 = arith.addf %37, %40 : vector<8x64xf32>
    %c2_53 = arith.constant 2 : index
    %c0_54 = arith.constant 0 : index
    %c0_55 = arith.constant 0 : index
    %42 = vector.load %arg2[%c2_53, %c0_54, %c0_55] : memref<9x32x64xbf16, #tpu.memory_space<vmem>>, vector<1x32x64xbf16>
    %43 = vector.shape_cast %42 : vector<1x32x64xbf16> to vector<32x64xbf16>
    %cst_56 = arith.constant dense<0.000000e+00> : vector<8x64xf32>
    %44 = tpu.matmul %4, %43, %cst_56 {dimension_numbers = #tpu.dot_dimension_numbers<[1], [0], [0], [1], [0, 0, 1, 1], [], []>} : vector<8x32xbf16>, vector<32x64xbf16>, vector<8x64xf32> -> vector<8x64xf32>
    %45 = arith.addf %41, %44 : vector<8x64xf32>
    %c3_57 = arith.constant 3 : index
    %c0_58 = arith.constant 0 : index
    %c0_59 = arith.constant 0 : index
    %46 = vector.load %arg2[%c3_57, %c0_58, %c0_59] : memref<9x32x64xbf16, #tpu.memory_space<vmem>>, vector<1x32x64xbf16>
    %47 = vector.shape_cast %46 : vector<1x32x64xbf16> to vector<32x64xbf16>
    %cst_60 = arith.constant dense<0.000000e+00> : vector<8x64xf32>
    %48 = tpu.matmul %18, %47, %cst_60 {dimension_numbers = #tpu.dot_dimension_numbers<[1], [0], [0], [1], [0, 0, 1, 1], [], []>} : vector<8x32xbf16>, vector<32x64xbf16>, vector<8x64xf32> -> vector<8x64xf32>
    %49 = arith.addf %45, %48 : vector<8x64xf32>
    %c4_61 = arith.constant 4 : index
    %c0_62 = arith.constant 0 : index
    %c0_63 = arith.constant 0 : index
    %50 = vector.load %arg2[%c4_61, %c0_62, %c0_63] : memref<9x32x64xbf16, #tpu.memory_space<vmem>>, vector<1x32x64xbf16>
    %51 = vector.shape_cast %50 : vector<1x32x64xbf16> to vector<32x64xbf16>
    %cst_64 = arith.constant dense<0.000000e+00> : vector<8x64xf32>
    %52 = tpu.matmul %26, %51, %cst_64 {dimension_numbers = #tpu.dot_dimension_numbers<[1], [0], [0], [1], [0, 0, 1, 1], [], []>} : vector<8x32xbf16>, vector<32x64xbf16>, vector<8x64xf32> -> vector<8x64xf32>
    %53 = arith.addf %49, %52 : vector<8x64xf32>
    %c5 = arith.constant 5 : index
    %c0_65 = arith.constant 0 : index
    %c0_66 = arith.constant 0 : index
    %54 = vector.load %arg2[%c5, %c0_65, %c0_66] : memref<9x32x64xbf16, #tpu.memory_space<vmem>>, vector<1x32x64xbf16>
    %55 = vector.shape_cast %54 : vector<1x32x64xbf16> to vector<32x64xbf16>
    %cst_67 = arith.constant dense<0.000000e+00> : vector<8x64xf32>
    %56 = tpu.matmul %20, %55, %cst_67 {dimension_numbers = #tpu.dot_dimension_numbers<[1], [0], [0], [1], [0, 0, 1, 1], [], []>} : vector<8x32xbf16>, vector<32x64xbf16>, vector<8x64xf32> -> vector<8x64xf32>
    %57 = arith.addf %53, %56 : vector<8x64xf32>
    %c6 = arith.constant 6 : index
    %c0_68 = arith.constant 0 : index
    %c0_69 = arith.constant 0 : index
    %58 = vector.load %arg2[%c6, %c0_68, %c0_69] : memref<9x32x64xbf16, #tpu.memory_space<vmem>>, vector<1x32x64xbf16>
    %59 = vector.shape_cast %58 : vector<1x32x64xbf16> to vector<32x64xbf16>
    %cst_70 = arith.constant dense<0.000000e+00> : vector<8x64xf32>
    %60 = tpu.matmul %6, %59, %cst_70 {dimension_numbers = #tpu.dot_dimension_numbers<[1], [0], [0], [1], [0, 0, 1, 1], [], []>} : vector<8x32xbf16>, vector<32x64xbf16>, vector<8x64xf32> -> vector<8x64xf32>
    %61 = arith.addf %57, %60 : vector<8x64xf32>
    %c7 = arith.constant 7 : index
    %c0_71 = arith.constant 0 : index
    %c0_72 = arith.constant 0 : index
    %62 = vector.load %arg2[%c7, %c0_71, %c0_72] : memref<9x32x64xbf16, #tpu.memory_space<vmem>>, vector<1x32x64xbf16>
    %63 = vector.shape_cast %62 : vector<1x32x64xbf16> to vector<32x64xbf16>
    %cst_73 = arith.constant dense<0.000000e+00> : vector<8x64xf32>
    %64 = tpu.matmul %14, %63, %cst_73 {dimension_numbers = #tpu.dot_dimension_numbers<[1], [0], [0], [1], [0, 0, 1, 1], [], []>} : vector<8x32xbf16>, vector<32x64xbf16>, vector<8x64xf32> -> vector<8x64xf32>
    %65 = arith.addf %61, %64 : vector<8x64xf32>
    %c8 = arith.constant 8 : index
    %c0_74 = arith.constant 0 : index
    %c0_75 = arith.constant 0 : index
    %66 = vector.load %arg2[%c8, %c0_74, %c0_75] : memref<9x32x64xbf16, #tpu.memory_space<vmem>>, vector<1x32x64xbf16>
    %67 = vector.shape_cast %66 : vector<1x32x64xbf16> to vector<32x64xbf16>
    %cst_76 = arith.constant dense<0.000000e+00> : vector<8x64xf32>
    %68 = tpu.matmul %8, %67, %cst_76 {dimension_numbers = #tpu.dot_dimension_numbers<[1], [0], [0], [1], [0, 0, 1, 1], [], []>} : vector<8x32xbf16>, vector<32x64xbf16>, vector<8x64xf32> -> vector<8x64xf32>
    %69 = arith.addf %65, %68 : vector<8x64xf32>
    %70 = vector.broadcast %0 : vector<1x64xf32> to vector<8x64xf32>
    %71 = arith.addf %69, %70 : vector<8x64xf32>
    %cst_77 = arith.constant 0.000000e+00 : f32
    %72 = vector.broadcast %cst_77 : f32 to vector<8x64xf32>
    %73 = arith.maximumf %71, %72 : vector<8x64xf32>
    %cst_78 = arith.constant 0.000000e+00 : f32
    %74 = vector.broadcast %cst_78 : f32 to vector<8x64xf32>
    %c0_79 = arith.constant 0 : index
    %c0_80 = arith.constant 0 : index
    %c0_81 = arith.constant 0 : index
    %75 = vector.load %arg2[%c0_79, %c0_80, %c0_81] : memref<9x32x64xbf16, #tpu.memory_space<vmem>>, vector<1x32x64xbf16>
    %76 = vector.shape_cast %75 : vector<1x32x64xbf16> to vector<32x64xbf16>
    %cst_82 = arith.constant dense<0.000000e+00> : vector<8x64xf32>
    %77 = tpu.matmul %10, %76, %cst_82 {dimension_numbers = #tpu.dot_dimension_numbers<[1], [0], [0], [1], [0, 0, 1, 1], [], []>} : vector<8x32xbf16>, vector<32x64xbf16>, vector<8x64xf32> -> vector<8x64xf32>
    %78 = arith.addf %74, %77 : vector<8x64xf32>
    %c1_83 = arith.constant 1 : index
    %c0_84 = arith.constant 0 : index
    %c0_85 = arith.constant 0 : index
    %79 = vector.load %arg2[%c1_83, %c0_84, %c0_85] : memref<9x32x64xbf16, #tpu.memory_space<vmem>>, vector<1x32x64xbf16>
    %80 = vector.shape_cast %79 : vector<1x32x64xbf16> to vector<32x64xbf16>
    %cst_86 = arith.constant dense<0.000000e+00> : vector<8x64xf32>
    %81 = tpu.matmul %4, %80, %cst_86 {dimension_numbers = #tpu.dot_dimension_numbers<[1], [0], [0], [1], [0, 0, 1, 1], [], []>} : vector<8x32xbf16>, vector<32x64xbf16>, vector<8x64xf32> -> vector<8x64xf32>
    %82 = arith.addf %78, %81 : vector<8x64xf32>
    %c2_87 = arith.constant 2 : index
    %c0_88 = arith.constant 0 : index
    %c0_89 = arith.constant 0 : index
    %83 = vector.load %arg2[%c2_87, %c0_88, %c0_89] : memref<9x32x64xbf16, #tpu.memory_space<vmem>>, vector<1x32x64xbf16>
    %84 = vector.shape_cast %83 : vector<1x32x64xbf16> to vector<32x64xbf16>
    %cst_90 = arith.constant dense<0.000000e+00> : vector<8x64xf32>
    %85 = tpu.matmul %12, %84, %cst_90 {dimension_numbers = #tpu.dot_dimension_numbers<[1], [0], [0], [1], [0, 0, 1, 1], [], []>} : vector<8x32xbf16>, vector<32x64xbf16>, vector<8x64xf32> -> vector<8x64xf32>
    %86 = arith.addf %82, %85 : vector<8x64xf32>
    %c3_91 = arith.constant 3 : index
    %c0_92 = arith.constant 0 : index
    %c0_93 = arith.constant 0 : index
    %87 = vector.load %arg2[%c3_91, %c0_92, %c0_93] : memref<9x32x64xbf16, #tpu.memory_space<vmem>>, vector<1x32x64xbf16>
    %88 = vector.shape_cast %87 : vector<1x32x64xbf16> to vector<32x64xbf16>
    %cst_94 = arith.constant dense<0.000000e+00> : vector<8x64xf32>
    %89 = tpu.matmul %26, %88, %cst_94 {dimension_numbers = #tpu.dot_dimension_numbers<[1], [0], [0], [1], [0, 0, 1, 1], [], []>} : vector<8x32xbf16>, vector<32x64xbf16>, vector<8x64xf32> -> vector<8x64xf32>
    %90 = arith.addf %86, %89 : vector<8x64xf32>
    %c4_95 = arith.constant 4 : index
    %c0_96 = arith.constant 0 : index
    %c0_97 = arith.constant 0 : index
    %91 = vector.load %arg2[%c4_95, %c0_96, %c0_97] : memref<9x32x64xbf16, #tpu.memory_space<vmem>>, vector<1x32x64xbf16>
    %92 = vector.shape_cast %91 : vector<1x32x64xbf16> to vector<32x64xbf16>
    %cst_98 = arith.constant dense<0.000000e+00> : vector<8x64xf32>
    %93 = tpu.matmul %20, %92, %cst_98 {dimension_numbers = #tpu.dot_dimension_numbers<[1], [0], [0], [1], [0, 0, 1, 1], [], []>} : vector<8x32xbf16>, vector<32x64xbf16>, vector<8x64xf32> -> vector<8x64xf32>
    %94 = arith.addf %90, %93 : vector<8x64xf32>
    %c5_99 = arith.constant 5 : index
    %c0_100 = arith.constant 0 : index
    %c0_101 = arith.constant 0 : index
    %95 = vector.load %arg2[%c5_99, %c0_100, %c0_101] : memref<9x32x64xbf16, #tpu.memory_space<vmem>>, vector<1x32x64xbf16>
    %96 = vector.shape_cast %95 : vector<1x32x64xbf16> to vector<32x64xbf16>
    %cst_102 = arith.constant dense<0.000000e+00> : vector<8x64xf32>
    %97 = tpu.matmul %28, %96, %cst_102 {dimension_numbers = #tpu.dot_dimension_numbers<[1], [0], [0], [1], [0, 0, 1, 1], [], []>} : vector<8x32xbf16>, vector<32x64xbf16>, vector<8x64xf32> -> vector<8x64xf32>
    %98 = arith.addf %94, %97 : vector<8x64xf32>
    %c6_103 = arith.constant 6 : index
    %c0_104 = arith.constant 0 : index
    %c0_105 = arith.constant 0 : index
    %99 = vector.load %arg2[%c6_103, %c0_104, %c0_105] : memref<9x32x64xbf16, #tpu.memory_space<vmem>>, vector<1x32x64xbf16>
    %100 = vector.shape_cast %99 : vector<1x32x64xbf16> to vector<32x64xbf16>
    %cst_106 = arith.constant dense<0.000000e+00> : vector<8x64xf32>
    %101 = tpu.matmul %14, %100, %cst_106 {dimension_numbers = #tpu.dot_dimension_numbers<[1], [0], [0], [1], [0, 0, 1, 1], [], []>} : vector<8x32xbf16>, vector<32x64xbf16>, vector<8x64xf32> -> vector<8x64xf32>
    %102 = arith.addf %98, %101 : vector<8x64xf32>
    %c7_107 = arith.constant 7 : index
    %c0_108 = arith.constant 0 : index
    %c0_109 = arith.constant 0 : index
    %103 = vector.load %arg2[%c7_107, %c0_108, %c0_109] : memref<9x32x64xbf16, #tpu.memory_space<vmem>>, vector<1x32x64xbf16>
    %104 = vector.shape_cast %103 : vector<1x32x64xbf16> to vector<32x64xbf16>
    %cst_110 = arith.constant dense<0.000000e+00> : vector<8x64xf32>
    %105 = tpu.matmul %8, %104, %cst_110 {dimension_numbers = #tpu.dot_dimension_numbers<[1], [0], [0], [1], [0, 0, 1, 1], [], []>} : vector<8x32xbf16>, vector<32x64xbf16>, vector<8x64xf32> -> vector<8x64xf32>
    %106 = arith.addf %102, %105 : vector<8x64xf32>
    %c8_111 = arith.constant 8 : index
    %c0_112 = arith.constant 0 : index
    %c0_113 = arith.constant 0 : index
    %107 = vector.load %arg2[%c8_111, %c0_112, %c0_113] : memref<9x32x64xbf16, #tpu.memory_space<vmem>>, vector<1x32x64xbf16>
    %108 = vector.shape_cast %107 : vector<1x32x64xbf16> to vector<32x64xbf16>
    %cst_114 = arith.constant dense<0.000000e+00> : vector<8x64xf32>
    %109 = tpu.matmul %16, %108, %cst_114 {dimension_numbers = #tpu.dot_dimension_numbers<[1], [0], [0], [1], [0, 0, 1, 1], [], []>} : vector<8x32xbf16>, vector<32x64xbf16>, vector<8x64xf32> -> vector<8x64xf32>
    %110 = arith.addf %106, %109 : vector<8x64xf32>
    %111 = vector.broadcast %0 : vector<1x64xf32> to vector<8x64xf32>
    %112 = arith.addf %110, %111 : vector<8x64xf32>
    %cst_115 = arith.constant 0.000000e+00 : f32
    %113 = vector.broadcast %cst_115 : f32 to vector<8x64xf32>
    %114 = arith.maximumf %112, %113 : vector<8x64xf32>
    %115 = arith.maximumf %73, %114 : vector<8x64xf32>
    %cst_116 = arith.constant 0.000000e+00 : f32
    %116 = vector.broadcast %cst_116 : f32 to vector<8x64xf32>
    %c0_117 = arith.constant 0 : index
    %c0_118 = arith.constant 0 : index
    %c0_119 = arith.constant 0 : index
    %117 = vector.load %arg2[%c0_117, %c0_118, %c0_119] : memref<9x32x64xbf16, #tpu.memory_space<vmem>>, vector<1x32x64xbf16>
    %118 = vector.shape_cast %117 : vector<1x32x64xbf16> to vector<32x64xbf16>
    %cst_120 = arith.constant dense<0.000000e+00> : vector<8x64xf32>
    %119 = tpu.matmul %18, %118, %cst_120 {dimension_numbers = #tpu.dot_dimension_numbers<[1], [0], [0], [1], [0, 0, 1, 1], [], []>} : vector<8x32xbf16>, vector<32x64xbf16>, vector<8x64xf32> -> vector<8x64xf32>
    %120 = arith.addf %116, %119 : vector<8x64xf32>
    %c1_121 = arith.constant 1 : index
    %c0_122 = arith.constant 0 : index
    %c0_123 = arith.constant 0 : index
    %121 = vector.load %arg2[%c1_121, %c0_122, %c0_123] : memref<9x32x64xbf16, #tpu.memory_space<vmem>>, vector<1x32x64xbf16>
    %122 = vector.shape_cast %121 : vector<1x32x64xbf16> to vector<32x64xbf16>
    %cst_124 = arith.constant dense<0.000000e+00> : vector<8x64xf32>
    %123 = tpu.matmul %26, %122, %cst_124 {dimension_numbers = #tpu.dot_dimension_numbers<[1], [0], [0], [1], [0, 0, 1, 1], [], []>} : vector<8x32xbf16>, vector<32x64xbf16>, vector<8x64xf32> -> vector<8x64xf32>
    %124 = arith.addf %120, %123 : vector<8x64xf32>
    %c2_125 = arith.constant 2 : index
    %c0_126 = arith.constant 0 : index
    %c0_127 = arith.constant 0 : index
    %125 = vector.load %arg2[%c2_125, %c0_126, %c0_127] : memref<9x32x64xbf16, #tpu.memory_space<vmem>>, vector<1x32x64xbf16>
    %126 = vector.shape_cast %125 : vector<1x32x64xbf16> to vector<32x64xbf16>
    %cst_128 = arith.constant dense<0.000000e+00> : vector<8x64xf32>
    %127 = tpu.matmul %20, %126, %cst_128 {dimension_numbers = #tpu.dot_dimension_numbers<[1], [0], [0], [1], [0, 0, 1, 1], [], []>} : vector<8x32xbf16>, vector<32x64xbf16>, vector<8x64xf32> -> vector<8x64xf32>
    %128 = arith.addf %124, %127 : vector<8x64xf32>
    %c3_129 = arith.constant 3 : index
    %c0_130 = arith.constant 0 : index
    %c0_131 = arith.constant 0 : index
    %129 = vector.load %arg2[%c3_129, %c0_130, %c0_131] : memref<9x32x64xbf16, #tpu.memory_space<vmem>>, vector<1x32x64xbf16>
    %130 = vector.shape_cast %129 : vector<1x32x64xbf16> to vector<32x64xbf16>
    %cst_132 = arith.constant dense<0.000000e+00> : vector<8x64xf32>
    %131 = tpu.matmul %6, %130, %cst_132 {dimension_numbers = #tpu.dot_dimension_numbers<[1], [0], [0], [1], [0, 0, 1, 1], [], []>} : vector<8x32xbf16>, vector<32x64xbf16>, vector<8x64xf32> -> vector<8x64xf32>
    %132 = arith.addf %128, %131 : vector<8x64xf32>
    %c4_133 = arith.constant 4 : index
    %c0_134 = arith.constant 0 : index
    %c0_135 = arith.constant 0 : index
    %133 = vector.load %arg2[%c4_133, %c0_134, %c0_135] : memref<9x32x64xbf16, #tpu.memory_space<vmem>>, vector<1x32x64xbf16>
    %134 = vector.shape_cast %133 : vector<1x32x64xbf16> to vector<32x64xbf16>
    %cst_136 = arith.constant dense<0.000000e+00> : vector<8x64xf32>
    %135 = tpu.matmul %14, %134, %cst_136 {dimension_numbers = #tpu.dot_dimension_numbers<[1], [0], [0], [1], [0, 0, 1, 1], [], []>} : vector<8x32xbf16>, vector<32x64xbf16>, vector<8x64xf32> -> vector<8x64xf32>
    %136 = arith.addf %132, %135 : vector<8x64xf32>
    %c5_137 = arith.constant 5 : index
    %c0_138 = arith.constant 0 : index
    %c0_139 = arith.constant 0 : index
    %137 = vector.load %arg2[%c5_137, %c0_138, %c0_139] : memref<9x32x64xbf16, #tpu.memory_space<vmem>>, vector<1x32x64xbf16>
    %138 = vector.shape_cast %137 : vector<1x32x64xbf16> to vector<32x64xbf16>
    %cst_140 = arith.constant dense<0.000000e+00> : vector<8x64xf32>
    %139 = tpu.matmul %8, %138, %cst_140 {dimension_numbers = #tpu.dot_dimension_numbers<[1], [0], [0], [1], [0, 0, 1, 1], [], []>} : vector<8x32xbf16>, vector<32x64xbf16>, vector<8x64xf32> -> vector<8x64xf32>
    %140 = arith.addf %136, %139 : vector<8x64xf32>
    %c6_141 = arith.constant 6 : index
    %c0_142 = arith.constant 0 : index
    %c0_143 = arith.constant 0 : index
    %141 = vector.load %arg2[%c6_141, %c0_142, %c0_143] : memref<9x32x64xbf16, #tpu.memory_space<vmem>>, vector<1x32x64xbf16>
    %142 = vector.shape_cast %141 : vector<1x32x64xbf16> to vector<32x64xbf16>
    %cst_144 = arith.constant dense<0.000000e+00> : vector<8x64xf32>
    %143 = tpu.matmul %22, %142, %cst_144 {dimension_numbers = #tpu.dot_dimension_numbers<[1], [0], [0], [1], [0, 0, 1, 1], [], []>} : vector<8x32xbf16>, vector<32x64xbf16>, vector<8x64xf32> -> vector<8x64xf32>
    %144 = arith.addf %140, %143 : vector<8x64xf32>
    %c7_145 = arith.constant 7 : index
    %c0_146 = arith.constant 0 : index
    %c0_147 = arith.constant 0 : index
    %145 = vector.load %arg2[%c7_145, %c0_146, %c0_147] : memref<9x32x64xbf16, #tpu.memory_space<vmem>>, vector<1x32x64xbf16>
    %146 = vector.shape_cast %145 : vector<1x32x64xbf16> to vector<32x64xbf16>
    %cst_148 = arith.constant dense<0.000000e+00> : vector<8x64xf32>
    %147 = tpu.matmul %30, %146, %cst_148 {dimension_numbers = #tpu.dot_dimension_numbers<[1], [0], [0], [1], [0, 0, 1, 1], [], []>} : vector<8x32xbf16>, vector<32x64xbf16>, vector<8x64xf32> -> vector<8x64xf32>
    %148 = arith.addf %144, %147 : vector<8x64xf32>
    %c8_149 = arith.constant 8 : index
    %c0_150 = arith.constant 0 : index
    %c0_151 = arith.constant 0 : index
    %149 = vector.load %arg2[%c8_149, %c0_150, %c0_151] : memref<9x32x64xbf16, #tpu.memory_space<vmem>>, vector<1x32x64xbf16>
    %150 = vector.shape_cast %149 : vector<1x32x64xbf16> to vector<32x64xbf16>
    %cst_152 = arith.constant dense<0.000000e+00> : vector<8x64xf32>
    %151 = tpu.matmul %24, %150, %cst_152 {dimension_numbers = #tpu.dot_dimension_numbers<[1], [0], [0], [1], [0, 0, 1, 1], [], []>} : vector<8x32xbf16>, vector<32x64xbf16>, vector<8x64xf32> -> vector<8x64xf32>
    %152 = arith.addf %148, %151 : vector<8x64xf32>
    %153 = vector.broadcast %0 : vector<1x64xf32> to vector<8x64xf32>
    %154 = arith.addf %152, %153 : vector<8x64xf32>
    %cst_153 = arith.constant 0.000000e+00 : f32
    %155 = vector.broadcast %cst_153 : f32 to vector<8x64xf32>
    %156 = arith.maximumf %154, %155 : vector<8x64xf32>
    %157 = arith.maximumf %115, %156 : vector<8x64xf32>
    %cst_154 = arith.constant 0.000000e+00 : f32
    %158 = vector.broadcast %cst_154 : f32 to vector<8x64xf32>
    %c0_155 = arith.constant 0 : index
    %c0_156 = arith.constant 0 : index
    %c0_157 = arith.constant 0 : index
    %159 = vector.load %arg2[%c0_155, %c0_156, %c0_157] : memref<9x32x64xbf16, #tpu.memory_space<vmem>>, vector<1x32x64xbf16>
    %160 = vector.shape_cast %159 : vector<1x32x64xbf16> to vector<32x64xbf16>
    %cst_158 = arith.constant dense<0.000000e+00> : vector<8x64xf32>
    %161 = tpu.matmul %26, %160, %cst_158 {dimension_numbers = #tpu.dot_dimension_numbers<[1], [0], [0], [1], [0, 0, 1, 1], [], []>} : vector<8x32xbf16>, vector<32x64xbf16>, vector<8x64xf32> -> vector<8x64xf32>
    %162 = arith.addf %158, %161 : vector<8x64xf32>
    %c1_159 = arith.constant 1 : index
    %c0_160 = arith.constant 0 : index
    %c0_161 = arith.constant 0 : index
    %163 = vector.load %arg2[%c1_159, %c0_160, %c0_161] : memref<9x32x64xbf16, #tpu.memory_space<vmem>>, vector<1x32x64xbf16>
    %164 = vector.shape_cast %163 : vector<1x32x64xbf16> to vector<32x64xbf16>
    %cst_162 = arith.constant dense<0.000000e+00> : vector<8x64xf32>
    %165 = tpu.matmul %20, %164, %cst_162 {dimension_numbers = #tpu.dot_dimension_numbers<[1], [0], [0], [1], [0, 0, 1, 1], [], []>} : vector<8x32xbf16>, vector<32x64xbf16>, vector<8x64xf32> -> vector<8x64xf32>
    %166 = arith.addf %162, %165 : vector<8x64xf32>
    %c2_163 = arith.constant 2 : index
    %c0_164 = arith.constant 0 : index
    %c0_165 = arith.constant 0 : index
    %167 = vector.load %arg2[%c2_163, %c0_164, %c0_165] : memref<9x32x64xbf16, #tpu.memory_space<vmem>>, vector<1x32x64xbf16>
    %168 = vector.shape_cast %167 : vector<1x32x64xbf16> to vector<32x64xbf16>
    %cst_166 = arith.constant dense<0.000000e+00> : vector<8x64xf32>
    %169 = tpu.matmul %28, %168, %cst_166 {dimension_numbers = #tpu.dot_dimension_numbers<[1], [0], [0], [1], [0, 0, 1, 1], [], []>} : vector<8x32xbf16>, vector<32x64xbf16>, vector<8x64xf32> -> vector<8x64xf32>
    %170 = arith.addf %166, %169 : vector<8x64xf32>
    %c3_167 = arith.constant 3 : index
    %c0_168 = arith.constant 0 : index
    %c0_169 = arith.constant 0 : index
    %171 = vector.load %arg2[%c3_167, %c0_168, %c0_169] : memref<9x32x64xbf16, #tpu.memory_space<vmem>>, vector<1x32x64xbf16>
    %172 = vector.shape_cast %171 : vector<1x32x64xbf16> to vector<32x64xbf16>
    %cst_170 = arith.constant dense<0.000000e+00> : vector<8x64xf32>
    %173 = tpu.matmul %14, %172, %cst_170 {dimension_numbers = #tpu.dot_dimension_numbers<[1], [0], [0], [1], [0, 0, 1, 1], [], []>} : vector<8x32xbf16>, vector<32x64xbf16>, vector<8x64xf32> -> vector<8x64xf32>
    %174 = arith.addf %170, %173 : vector<8x64xf32>
    %c4_171 = arith.constant 4 : index
    %c0_172 = arith.constant 0 : index
    %c0_173 = arith.constant 0 : index
    %175 = vector.load %arg2[%c4_171, %c0_172, %c0_173] : memref<9x32x64xbf16, #tpu.memory_space<vmem>>, vector<1x32x64xbf16>
    %176 = vector.shape_cast %175 : vector<1x32x64xbf16> to vector<32x64xbf16>
    %cst_174 = arith.constant dense<0.000000e+00> : vector<8x64xf32>
    %177 = tpu.matmul %8, %176, %cst_174 {dimension_numbers = #tpu.dot_dimension_numbers<[1], [0], [0], [1], [0, 0, 1, 1], [], []>} : vector<8x32xbf16>, vector<32x64xbf16>, vector<8x64xf32> -> vector<8x64xf32>
    %178 = arith.addf %174, %177 : vector<8x64xf32>
    %c5_175 = arith.constant 5 : index
    %c0_176 = arith.constant 0 : index
    %c0_177 = arith.constant 0 : index
    %179 = vector.load %arg2[%c5_175, %c0_176, %c0_177] : memref<9x32x64xbf16, #tpu.memory_space<vmem>>, vector<1x32x64xbf16>
    %180 = vector.shape_cast %179 : vector<1x32x64xbf16> to vector<32x64xbf16>
    %cst_178 = arith.constant dense<0.000000e+00> : vector<8x64xf32>
    %181 = tpu.matmul %16, %180, %cst_178 {dimension_numbers = #tpu.dot_dimension_numbers<[1], [0], [0], [1], [0, 0, 1, 1], [], []>} : vector<8x32xbf16>, vector<32x64xbf16>, vector<8x64xf32> -> vector<8x64xf32>
    %182 = arith.addf %178, %181 : vector<8x64xf32>
    %c6_179 = arith.constant 6 : index
    %c0_180 = arith.constant 0 : index
    %c0_181 = arith.constant 0 : index
    %183 = vector.load %arg2[%c6_179, %c0_180, %c0_181] : memref<9x32x64xbf16, #tpu.memory_space<vmem>>, vector<1x32x64xbf16>
    %184 = vector.shape_cast %183 : vector<1x32x64xbf16> to vector<32x64xbf16>
    %cst_182 = arith.constant dense<0.000000e+00> : vector<8x64xf32>
    %185 = tpu.matmul %30, %184, %cst_182 {dimension_numbers = #tpu.dot_dimension_numbers<[1], [0], [0], [1], [0, 0, 1, 1], [], []>} : vector<8x32xbf16>, vector<32x64xbf16>, vector<8x64xf32> -> vector<8x64xf32>
    %186 = arith.addf %182, %185 : vector<8x64xf32>
    %c7_183 = arith.constant 7 : index
    %c0_184 = arith.constant 0 : index
    %c0_185 = arith.constant 0 : index
    %187 = vector.load %arg2[%c7_183, %c0_184, %c0_185] : memref<9x32x64xbf16, #tpu.memory_space<vmem>>, vector<1x32x64xbf16>
    %188 = vector.shape_cast %187 : vector<1x32x64xbf16> to vector<32x64xbf16>
    %cst_186 = arith.constant dense<0.000000e+00> : vector<8x64xf32>
    %189 = tpu.matmul %24, %188, %cst_186 {dimension_numbers = #tpu.dot_dimension_numbers<[1], [0], [0], [1], [0, 0, 1, 1], [], []>} : vector<8x32xbf16>, vector<32x64xbf16>, vector<8x64xf32> -> vector<8x64xf32>
    %190 = arith.addf %186, %189 : vector<8x64xf32>
    %c8_187 = arith.constant 8 : index
    %c0_188 = arith.constant 0 : index
    %c0_189 = arith.constant 0 : index
    %191 = vector.load %arg2[%c8_187, %c0_188, %c0_189] : memref<9x32x64xbf16, #tpu.memory_space<vmem>>, vector<1x32x64xbf16>
    %192 = vector.shape_cast %191 : vector<1x32x64xbf16> to vector<32x64xbf16>
    %cst_190 = arith.constant dense<0.000000e+00> : vector<8x64xf32>
    %193 = tpu.matmul %32, %192, %cst_190 {dimension_numbers = #tpu.dot_dimension_numbers<[1], [0], [0], [1], [0, 0, 1, 1], [], []>} : vector<8x32xbf16>, vector<32x64xbf16>, vector<8x64xf32> -> vector<8x64xf32>
    %194 = arith.addf %190, %193 : vector<8x64xf32>
    %195 = vector.broadcast %0 : vector<1x64xf32> to vector<8x64xf32>
    %196 = arith.addf %194, %195 : vector<8x64xf32>
    %cst_191 = arith.constant 0.000000e+00 : f32
    %197 = vector.broadcast %cst_191 : f32 to vector<8x64xf32>
    %198 = arith.maximumf %196, %197 : vector<8x64xf32>
    %199 = arith.maximumf %157, %198 : vector<8x64xf32>
    %c0_192 = arith.constant 0 : index
    %c0_193 = arith.constant 0 : index
    %c0_194 = arith.constant 0 : index
    %200 = vector.load %arg4[%c0_192, %c0_193, %c0_194] : memref<1x8x64xf32, #tpu.memory_space<vmem>>, vector<1x8x64xf32>
    %201 = vector.shape_cast %200 : vector<1x8x64xf32> to vector<8x64xf32>
    %202 = vector.shape_cast %199 : vector<8x64xf32> to vector<1x8x64xf32>
    tpu.vector_store %arg4[%c0_192, %c0_193, %c0_194], %202 {strides = array<i32>} : memref<1x8x64xf32, #tpu.memory_space<vmem>>, vector<1x8x64xf32>,
    return
  }
  func.func @transform_0(%arg0: i32) -> (i32, i32, i32) {
    %c0_i32 = arith.constant 0 : i32
    %c0_i32_0 = arith.constant 0 : i32
    %c0_i32_1 = arith.constant 0 : i32
    return %arg0, %c0_i32, %c0_i32_0 : i32, i32, i32
  }
  func.func @transform_1(%arg0: i32) -> (i32, i32, i32) {
    %c0_i32 = arith.constant 0 : i32
    %c0_i32_0 = arith.constant 0 : i32
    %c0_i32_1 = arith.constant 0 : i32
    %c0_i32_2 = arith.constant 0 : i32
    return %c0_i32, %c0_i32_0, %c0_i32_1 : i32, i32, i32
  }
  func.func @transform_2(%arg0: i32) -> (i32, i32) {
    %c0_i32 = arith.constant 0 : i32
    %c0_i32_0 = arith.constant 0 : i32
    %c0_i32_1 = arith.constant 0 : i32
    return %c0_i32, %c0_i32_0 : i32, i32
  }
  func.func @transform_3(%arg0: i32) -> (i32, i32, i32) {
    %c0_i32 = arith.constant 0 : i32
    %c0_i32_0 = arith.constant 0 : i32
    %c0_i32_1 = arith.constant 0 : i32
    return %arg0, %c0_i32, %c0_i32_0 : i32, i32, i32
  }
}

module attributes {stable_mosaic.version = 11 : i64} {
  func.func @kernel(%arg0: i32, %arg1: memref<4x5x40xbf16, #tpu.memory_space<vmem>>, %arg2: memref<9x32x64xbf16, #tpu.memory_space<vmem>>, %arg3: memref<1x64xf32, #tpu.memory_space<vmem>>, %arg4: memref<1x4x64xf32, #tpu.memory_space<vmem>>) attributes {dimension_semantics = [#tpu.dimension_semantics<parallel>], iteration_bounds = array<i64: 2>, scalar_prefetch = 0 : i64, scratch_operands = 0 : i64, tpu.core_type = #tpu.core_type<tc>, window_params = [{transform_indices = @transform_0, window_bounds = array<i64: 4, 5, 40>}, {pipeline_mode = #tpu.pipeline_mode<synchronous>, transform_indices = @transform_1, window_bounds = array<i64: 9, 32, 64>}, {pipeline_mode = #tpu.pipeline_mode<synchronous>, transform_indices = @transform_2, window_bounds = array<i64: 1, 64>}, {transform_indices = @transform_3, window_bounds = array<i64: 1, 4, 64>}]} {
    %c0 = arith.constant 0 : index
    %c0_0 = arith.constant 0 : index
    %0 = vector.load %arg3[%c0, %c0_0] : memref<1x64xf32, #tpu.memory_space<vmem>>, vector<1x64xf32>
    %c0_1 = arith.constant 0 : index
    %c0_2 = arith.constant 0 : index
    %c0_3 = arith.constant 0 : index
    %1 = vector.load %arg1[%c0_1, %c0_2, %c0_3] : memref<4x5x40xbf16, #tpu.memory_space<vmem>>, vector<1x4x32xbf16>
    %2 = vector.shape_cast %1 : vector<1x4x32xbf16> to vector<4x32xbf16>
    %c0_4 = arith.constant 0 : index
    %c0_5 = arith.constant 0 : index
    %c8 = arith.constant 8 : index
    %3 = vector.load %arg1[%c0_4, %c0_5, %c8] : memref<4x5x40xbf16, #tpu.memory_space<vmem>>, vector<1x4x32xbf16>
    %4 = vector.shape_cast %3 : vector<1x4x32xbf16> to vector<4x32xbf16>
    %c0_6 = arith.constant 0 : index
    %c1 = arith.constant 1 : index
    %c0_7 = arith.constant 0 : index
    %5 = vector.load %arg1[%c0_6, %c1, %c0_7] : memref<4x5x40xbf16, #tpu.memory_space<vmem>>, vector<1x4x32xbf16>
    %6 = vector.shape_cast %5 : vector<1x4x32xbf16> to vector<4x32xbf16>
    %c0_8 = arith.constant 0 : index
    %c1_9 = arith.constant 1 : index
    %c8_10 = arith.constant 8 : index
    %7 = vector.load %arg1[%c0_8, %c1_9, %c8_10] : memref<4x5x40xbf16, #tpu.memory_space<vmem>>, vector<1x4x32xbf16>
    %8 = vector.shape_cast %7 : vector<1x4x32xbf16> to vector<4x32xbf16>
    %c1_11 = arith.constant 1 : index
    %c0_12 = arith.constant 0 : index
    %c0_13 = arith.constant 0 : index
    %9 = vector.load %arg1[%c1_11, %c0_12, %c0_13] : memref<4x5x40xbf16, #tpu.memory_space<vmem>>, vector<1x4x32xbf16>
    %10 = vector.shape_cast %9 : vector<1x4x32xbf16> to vector<4x32xbf16>
    %c1_14 = arith.constant 1 : index
    %c0_15 = arith.constant 0 : index
    %c8_16 = arith.constant 8 : index
    %11 = vector.load %arg1[%c1_14, %c0_15, %c8_16] : memref<4x5x40xbf16, #tpu.memory_space<vmem>>, vector<1x4x32xbf16>
    %12 = vector.shape_cast %11 : vector<1x4x32xbf16> to vector<4x32xbf16>
    %c1_17 = arith.constant 1 : index
    %c1_18 = arith.constant 1 : index
    %c0_19 = arith.constant 0 : index
    %13 = vector.load %arg1[%c1_17, %c1_18, %c0_19] : memref<4x5x40xbf16, #tpu.memory_space<vmem>>, vector<1x4x32xbf16>
    %14 = vector.shape_cast %13 : vector<1x4x32xbf16> to vector<4x32xbf16>
    %c1_20 = arith.constant 1 : index
    %c1_21 = arith.constant 1 : index
    %c8_22 = arith.constant 8 : index
    %15 = vector.load %arg1[%c1_20, %c1_21, %c8_22] : memref<4x5x40xbf16, #tpu.memory_space<vmem>>, vector<1x4x32xbf16>
    %16 = vector.shape_cast %15 : vector<1x4x32xbf16> to vector<4x32xbf16>
    %c2 = arith.constant 2 : index
    %c0_23 = arith.constant 0 : index
    %c0_24 = arith.constant 0 : index
    %17 = vector.load %arg1[%c2, %c0_23, %c0_24] : memref<4x5x40xbf16, #tpu.memory_space<vmem>>, vector<1x4x32xbf16>
    %18 = vector.shape_cast %17 : vector<1x4x32xbf16> to vector<4x32xbf16>
    %c2_25 = arith.constant 2 : index
    %c0_26 = arith.constant 0 : index
    %c8_27 = arith.constant 8 : index
    %19 = vector.load %arg1[%c2_25, %c0_26, %c8_27] : memref<4x5x40xbf16, #tpu.memory_space<vmem>>, vector<1x4x32xbf16>
    %20 = vector.shape_cast %19 : vector<1x4x32xbf16> to vector<4x32xbf16>
    %c2_28 = arith.constant 2 : index
    %c1_29 = arith.constant 1 : index
    %c0_30 = arith.constant 0 : index
    %21 = vector.load %arg1[%c2_28, %c1_29, %c0_30] : memref<4x5x40xbf16, #tpu.memory_space<vmem>>, vector<1x4x32xbf16>
    %22 = vector.shape_cast %21 : vector<1x4x32xbf16> to vector<4x32xbf16>
    %c2_31 = arith.constant 2 : index
    %c1_32 = arith.constant 1 : index
    %c8_33 = arith.constant 8 : index
    %23 = vector.load %arg1[%c2_31, %c1_32, %c8_33] : memref<4x5x40xbf16, #tpu.memory_space<vmem>>, vector<1x4x32xbf16>
    %24 = vector.shape_cast %23 : vector<1x4x32xbf16> to vector<4x32xbf16>
    %c3 = arith.constant 3 : index
    %c0_34 = arith.constant 0 : index
    %c0_35 = arith.constant 0 : index
    %25 = vector.load %arg1[%c3, %c0_34, %c0_35] : memref<4x5x40xbf16, #tpu.memory_space<vmem>>, vector<1x4x32xbf16>
    %26 = vector.shape_cast %25 : vector<1x4x32xbf16> to vector<4x32xbf16>
    %c3_36 = arith.constant 3 : index
    %c0_37 = arith.constant 0 : index
    %c8_38 = arith.constant 8 : index
    %27 = vector.load %arg1[%c3_36, %c0_37, %c8_38] : memref<4x5x40xbf16, #tpu.memory_space<vmem>>, vector<1x4x32xbf16>
    %28 = vector.shape_cast %27 : vector<1x4x32xbf16> to vector<4x32xbf16>
    %c3_39 = arith.constant 3 : index
    %c1_40 = arith.constant 1 : index
    %c0_41 = arith.constant 0 : index
    %29 = vector.load %arg1[%c3_39, %c1_40, %c0_41] : memref<4x5x40xbf16, #tpu.memory_space<vmem>>, vector<1x4x32xbf16>
    %30 = vector.shape_cast %29 : vector<1x4x32xbf16> to vector<4x32xbf16>
    %c3_42 = arith.constant 3 : index
    %c1_43 = arith.constant 1 : index
    %c8_44 = arith.constant 8 : index
    %31 = vector.load %arg1[%c3_42, %c1_43, %c8_44] : memref<4x5x40xbf16, #tpu.memory_space<vmem>>, vector<1x4x32xbf16>
    %32 = vector.shape_cast %31 : vector<1x4x32xbf16> to vector<4x32xbf16>
    %cst = arith.constant 0.000000e+00 : f32
    %33 = vector.broadcast %cst : f32 to vector<4x64xf32>
    %c0_45 = arith.constant 0 : index
    %c0_46 = arith.constant 0 : index
    %c0_47 = arith.constant 0 : index
    %34 = vector.load %arg2[%c0_45, %c0_46, %c0_47] : memref<9x32x64xbf16, #tpu.memory_space<vmem>>, vector<1x32x64xbf16>
    %35 = vector.shape_cast %34 : vector<1x32x64xbf16> to vector<32x64xbf16>
    %cst_48 = arith.constant dense<0.000000e+00> : vector<4x64xf32>
    %36 = tpu.matmul %2, %35, %cst_48 {dimension_numbers = #tpu.dot_dimension_numbers<[1], [0], [0], [1], [0, 0, 1, 1], [], []>} : vector<4x32xbf16>, vector<32x64xbf16>, vector<4x64xf32> -> vector<4x64xf32>
    %37 = arith.addf %33, %36 : vector<4x64xf32>
    %c1_49 = arith.constant 1 : index
    %c0_50 = arith.constant 0 : index
    %c0_51 = arith.constant 0 : index
    %38 = vector.load %arg2[%c1_49, %c0_50, %c0_51] : memref<9x32x64xbf16, #tpu.memory_space<vmem>>, vector<1x32x64xbf16>
    %39 = vector.shape_cast %38 : vector<1x32x64xbf16> to vector<32x64xbf16>
    %cst_52 = arith.constant dense<0.000000e+00> : vector<4x64xf32>
    %40 = tpu.matmul %10, %39, %cst_52 {dimension_numbers = #tpu.dot_dimension_numbers<[1], [0], [0], [1], [0, 0, 1, 1], [], []>} : vector<4x32xbf16>, vector<32x64xbf16>, vector<4x64xf32> -> vector<4x64xf32>
    %41 = arith.addf %37, %40 : vector<4x64xf32>
    %c2_53 = arith.constant 2 : index
    %c0_54 = arith.constant 0 : index
    %c0_55 = arith.constant 0 : index
    %42 = vector.load %arg2[%c2_53, %c0_54, %c0_55] : memref<9x32x64xbf16, #tpu.memory_space<vmem>>, vector<1x32x64xbf16>
    %43 = vector.shape_cast %42 : vector<1x32x64xbf16> to vector<32x64xbf16>
    %cst_56 = arith.constant dense<0.000000e+00> : vector<4x64xf32>
    %44 = tpu.matmul %4, %43, %cst_56 {dimension_numbers = #tpu.dot_dimension_numbers<[1], [0], [0], [1], [0, 0, 1, 1], [], []>} : vector<4x32xbf16>, vector<32x64xbf16>, vector<4x64xf32> -> vector<4x64xf32>
    %45 = arith.addf %41, %44 : vector<4x64xf32>
    %c3_57 = arith.constant 3 : index
    %c0_58 = arith.constant 0 : index
    %c0_59 = arith.constant 0 : index
    %46 = vector.load %arg2[%c3_57, %c0_58, %c0_59] : memref<9x32x64xbf16, #tpu.memory_space<vmem>>, vector<1x32x64xbf16>
    %47 = vector.shape_cast %46 : vector<1x32x64xbf16> to vector<32x64xbf16>
    %cst_60 = arith.constant dense<0.000000e+00> : vector<4x64xf32>
    %48 = tpu.matmul %18, %47, %cst_60 {dimension_numbers = #tpu.dot_dimension_numbers<[1], [0], [0], [1], [0, 0, 1, 1], [], []>} : vector<4x32xbf16>, vector<32x64xbf16>, vector<4x64xf32> -> vector<4x64xf32>
    %49 = arith.addf %45, %48 : vector<4x64xf32>
    %c4 = arith.constant 4 : index
    %c0_61 = arith.constant 0 : index
    %c0_62 = arith.constant 0 : index
    %50 = vector.load %arg2[%c4, %c0_61, %c0_62] : memref<9x32x64xbf16, #tpu.memory_space<vmem>>, vector<1x32x64xbf16>
    %51 = vector.shape_cast %50 : vector<1x32x64xbf16> to vector<32x64xbf16>
    %cst_63 = arith.constant dense<0.000000e+00> : vector<4x64xf32>
    %52 = tpu.matmul %26, %51, %cst_63 {dimension_numbers = #tpu.dot_dimension_numbers<[1], [0], [0], [1], [0, 0, 1, 1], [], []>} : vector<4x32xbf16>, vector<32x64xbf16>, vector<4x64xf32> -> vector<4x64xf32>
    %53 = arith.addf %49, %52 : vector<4x64xf32>
    %c5 = arith.constant 5 : index
    %c0_64 = arith.constant 0 : index
    %c0_65 = arith.constant 0 : index
    %54 = vector.load %arg2[%c5, %c0_64, %c0_65] : memref<9x32x64xbf16, #tpu.memory_space<vmem>>, vector<1x32x64xbf16>
    %55 = vector.shape_cast %54 : vector<1x32x64xbf16> to vector<32x64xbf16>
    %cst_66 = arith.constant dense<0.000000e+00> : vector<4x64xf32>
    %56 = tpu.matmul %20, %55, %cst_66 {dimension_numbers = #tpu.dot_dimension_numbers<[1], [0], [0], [1], [0, 0, 1, 1], [], []>} : vector<4x32xbf16>, vector<32x64xbf16>, vector<4x64xf32> -> vector<4x64xf32>
    %57 = arith.addf %53, %56 : vector<4x64xf32>
    %c6 = arith.constant 6 : index
    %c0_67 = arith.constant 0 : index
    %c0_68 = arith.constant 0 : index
    %58 = vector.load %arg2[%c6, %c0_67, %c0_68] : memref<9x32x64xbf16, #tpu.memory_space<vmem>>, vector<1x32x64xbf16>
    %59 = vector.shape_cast %58 : vector<1x32x64xbf16> to vector<32x64xbf16>
    %cst_69 = arith.constant dense<0.000000e+00> : vector<4x64xf32>
    %60 = tpu.matmul %6, %59, %cst_69 {dimension_numbers = #tpu.dot_dimension_numbers<[1], [0], [0], [1], [0, 0, 1, 1], [], []>} : vector<4x32xbf16>, vector<32x64xbf16>, vector<4x64xf32> -> vector<4x64xf32>
    %61 = arith.addf %57, %60 : vector<4x64xf32>
    %c7 = arith.constant 7 : index
    %c0_70 = arith.constant 0 : index
    %c0_71 = arith.constant 0 : index
    %62 = vector.load %arg2[%c7, %c0_70, %c0_71] : memref<9x32x64xbf16, #tpu.memory_space<vmem>>, vector<1x32x64xbf16>
    %63 = vector.shape_cast %62 : vector<1x32x64xbf16> to vector<32x64xbf16>
    %cst_72 = arith.constant dense<0.000000e+00> : vector<4x64xf32>
    %64 = tpu.matmul %14, %63, %cst_72 {dimension_numbers = #tpu.dot_dimension_numbers<[1], [0], [0], [1], [0, 0, 1, 1], [], []>} : vector<4x32xbf16>, vector<32x64xbf16>, vector<4x64xf32> -> vector<4x64xf32>
    %65 = arith.addf %61, %64 : vector<4x64xf32>
    %c8_73 = arith.constant 8 : index
    %c0_74 = arith.constant 0 : index
    %c0_75 = arith.constant 0 : index
    %66 = vector.load %arg2[%c8_73, %c0_74, %c0_75] : memref<9x32x64xbf16, #tpu.memory_space<vmem>>, vector<1x32x64xbf16>
    %67 = vector.shape_cast %66 : vector<1x32x64xbf16> to vector<32x64xbf16>
    %cst_76 = arith.constant dense<0.000000e+00> : vector<4x64xf32>
    %68 = tpu.matmul %8, %67, %cst_76 {dimension_numbers = #tpu.dot_dimension_numbers<[1], [0], [0], [1], [0, 0, 1, 1], [], []>} : vector<4x32xbf16>, vector<32x64xbf16>, vector<4x64xf32> -> vector<4x64xf32>
    %69 = arith.addf %65, %68 : vector<4x64xf32>
    %70 = vector.broadcast %0 : vector<1x64xf32> to vector<4x64xf32>
    %71 = arith.addf %69, %70 : vector<4x64xf32>
    %cst_77 = arith.constant 0.000000e+00 : f32
    %72 = vector.broadcast %cst_77 : f32 to vector<4x64xf32>
    %73 = arith.maximumf %71, %72 : vector<4x64xf32>
    %cst_78 = arith.constant 0.000000e+00 : f32
    %74 = vector.broadcast %cst_78 : f32 to vector<4x64xf32>
    %c0_79 = arith.constant 0 : index
    %c0_80 = arith.constant 0 : index
    %c0_81 = arith.constant 0 : index
    %75 = vector.load %arg2[%c0_79, %c0_80, %c0_81] : memref<9x32x64xbf16, #tpu.memory_space<vmem>>, vector<1x32x64xbf16>
    %76 = vector.shape_cast %75 : vector<1x32x64xbf16> to vector<32x64xbf16>
    %cst_82 = arith.constant dense<0.000000e+00> : vector<4x64xf32>
    %77 = tpu.matmul %10, %76, %cst_82 {dimension_numbers = #tpu.dot_dimension_numbers<[1], [0], [0], [1], [0, 0, 1, 1], [], []>} : vector<4x32xbf16>, vector<32x64xbf16>, vector<4x64xf32> -> vector<4x64xf32>
    %78 = arith.addf %74, %77 : vector<4x64xf32>
    %c1_83 = arith.constant 1 : index
    %c0_84 = arith.constant 0 : index
    %c0_85 = arith.constant 0 : index
    %79 = vector.load %arg2[%c1_83, %c0_84, %c0_85] : memref<9x32x64xbf16, #tpu.memory_space<vmem>>, vector<1x32x64xbf16>
    %80 = vector.shape_cast %79 : vector<1x32x64xbf16> to vector<32x64xbf16>
    %cst_86 = arith.constant dense<0.000000e+00> : vector<4x64xf32>
    %81 = tpu.matmul %4, %80, %cst_86 {dimension_numbers = #tpu.dot_dimension_numbers<[1], [0], [0], [1], [0, 0, 1, 1], [], []>} : vector<4x32xbf16>, vector<32x64xbf16>, vector<4x64xf32> -> vector<4x64xf32>
    %82 = arith.addf %78, %81 : vector<4x64xf32>
    %c2_87 = arith.constant 2 : index
    %c0_88 = arith.constant 0 : index
    %c0_89 = arith.constant 0 : index
    %83 = vector.load %arg2[%c2_87, %c0_88, %c0_89] : memref<9x32x64xbf16, #tpu.memory_space<vmem>>, vector<1x32x64xbf16>
    %84 = vector.shape_cast %83 : vector<1x32x64xbf16> to vector<32x64xbf16>
    %cst_90 = arith.constant dense<0.000000e+00> : vector<4x64xf32>
    %85 = tpu.matmul %12, %84, %cst_90 {dimension_numbers = #tpu.dot_dimension_numbers<[1], [0], [0], [1], [0, 0, 1, 1], [], []>} : vector<4x32xbf16>, vector<32x64xbf16>, vector<4x64xf32> -> vector<4x64xf32>
    %86 = arith.addf %82, %85 : vector<4x64xf32>
    %c3_91 = arith.constant 3 : index
    %c0_92 = arith.constant 0 : index
    %c0_93 = arith.constant 0 : index
    %87 = vector.load %arg2[%c3_91, %c0_92, %c0_93] : memref<9x32x64xbf16, #tpu.memory_space<vmem>>, vector<1x32x64xbf16>
    %88 = vector.shape_cast %87 : vector<1x32x64xbf16> to vector<32x64xbf16>
    %cst_94 = arith.constant dense<0.000000e+00> : vector<4x64xf32>
    %89 = tpu.matmul %26, %88, %cst_94 {dimension_numbers = #tpu.dot_dimension_numbers<[1], [0], [0], [1], [0, 0, 1, 1], [], []>} : vector<4x32xbf16>, vector<32x64xbf16>, vector<4x64xf32> -> vector<4x64xf32>
    %90 = arith.addf %86, %89 : vector<4x64xf32>
    %c4_95 = arith.constant 4 : index
    %c0_96 = arith.constant 0 : index
    %c0_97 = arith.constant 0 : index
    %91 = vector.load %arg2[%c4_95, %c0_96, %c0_97] : memref<9x32x64xbf16, #tpu.memory_space<vmem>>, vector<1x32x64xbf16>
    %92 = vector.shape_cast %91 : vector<1x32x64xbf16> to vector<32x64xbf16>
    %cst_98 = arith.constant dense<0.000000e+00> : vector<4x64xf32>
    %93 = tpu.matmul %20, %92, %cst_98 {dimension_numbers = #tpu.dot_dimension_numbers<[1], [0], [0], [1], [0, 0, 1, 1], [], []>} : vector<4x32xbf16>, vector<32x64xbf16>, vector<4x64xf32> -> vector<4x64xf32>
    %94 = arith.addf %90, %93 : vector<4x64xf32>
    %c5_99 = arith.constant 5 : index
    %c0_100 = arith.constant 0 : index
    %c0_101 = arith.constant 0 : index
    %95 = vector.load %arg2[%c5_99, %c0_100, %c0_101] : memref<9x32x64xbf16, #tpu.memory_space<vmem>>, vector<1x32x64xbf16>
    %96 = vector.shape_cast %95 : vector<1x32x64xbf16> to vector<32x64xbf16>
    %cst_102 = arith.constant dense<0.000000e+00> : vector<4x64xf32>
    %97 = tpu.matmul %28, %96, %cst_102 {dimension_numbers = #tpu.dot_dimension_numbers<[1], [0], [0], [1], [0, 0, 1, 1], [], []>} : vector<4x32xbf16>, vector<32x64xbf16>, vector<4x64xf32> -> vector<4x64xf32>
    %98 = arith.addf %94, %97 : vector<4x64xf32>
    %c6_103 = arith.constant 6 : index
    %c0_104 = arith.constant 0 : index
    %c0_105 = arith.constant 0 : index
    %99 = vector.load %arg2[%c6_103, %c0_104, %c0_105] : memref<9x32x64xbf16, #tpu.memory_space<vmem>>, vector<1x32x64xbf16>
    %100 = vector.shape_cast %99 : vector<1x32x64xbf16> to vector<32x64xbf16>
    %cst_106 = arith.constant dense<0.000000e+00> : vector<4x64xf32>
    %101 = tpu.matmul %14, %100, %cst_106 {dimension_numbers = #tpu.dot_dimension_numbers<[1], [0], [0], [1], [0, 0, 1, 1], [], []>} : vector<4x32xbf16>, vector<32x64xbf16>, vector<4x64xf32> -> vector<4x64xf32>
    %102 = arith.addf %98, %101 : vector<4x64xf32>
    %c7_107 = arith.constant 7 : index
    %c0_108 = arith.constant 0 : index
    %c0_109 = arith.constant 0 : index
    %103 = vector.load %arg2[%c7_107, %c0_108, %c0_109] : memref<9x32x64xbf16, #tpu.memory_space<vmem>>, vector<1x32x64xbf16>
    %104 = vector.shape_cast %103 : vector<1x32x64xbf16> to vector<32x64xbf16>
    %cst_110 = arith.constant dense<0.000000e+00> : vector<4x64xf32>
    %105 = tpu.matmul %8, %104, %cst_110 {dimension_numbers = #tpu.dot_dimension_numbers<[1], [0], [0], [1], [0, 0, 1, 1], [], []>} : vector<4x32xbf16>, vector<32x64xbf16>, vector<4x64xf32> -> vector<4x64xf32>
    %106 = arith.addf %102, %105 : vector<4x64xf32>
    %c8_111 = arith.constant 8 : index
    %c0_112 = arith.constant 0 : index
    %c0_113 = arith.constant 0 : index
    %107 = vector.load %arg2[%c8_111, %c0_112, %c0_113] : memref<9x32x64xbf16, #tpu.memory_space<vmem>>, vector<1x32x64xbf16>
    %108 = vector.shape_cast %107 : vector<1x32x64xbf16> to vector<32x64xbf16>
    %cst_114 = arith.constant dense<0.000000e+00> : vector<4x64xf32>
    %109 = tpu.matmul %16, %108, %cst_114 {dimension_numbers = #tpu.dot_dimension_numbers<[1], [0], [0], [1], [0, 0, 1, 1], [], []>} : vector<4x32xbf16>, vector<32x64xbf16>, vector<4x64xf32> -> vector<4x64xf32>
    %110 = arith.addf %106, %109 : vector<4x64xf32>
    %111 = vector.broadcast %0 : vector<1x64xf32> to vector<4x64xf32>
    %112 = arith.addf %110, %111 : vector<4x64xf32>
    %cst_115 = arith.constant 0.000000e+00 : f32
    %113 = vector.broadcast %cst_115 : f32 to vector<4x64xf32>
    %114 = arith.maximumf %112, %113 : vector<4x64xf32>
    %115 = arith.maximumf %73, %114 : vector<4x64xf32>
    %cst_116 = arith.constant 0.000000e+00 : f32
    %116 = vector.broadcast %cst_116 : f32 to vector<4x64xf32>
    %c0_117 = arith.constant 0 : index
    %c0_118 = arith.constant 0 : index
    %c0_119 = arith.constant 0 : index
    %117 = vector.load %arg2[%c0_117, %c0_118, %c0_119] : memref<9x32x64xbf16, #tpu.memory_space<vmem>>, vector<1x32x64xbf16>
    %118 = vector.shape_cast %117 : vector<1x32x64xbf16> to vector<32x64xbf16>
    %cst_120 = arith.constant dense<0.000000e+00> : vector<4x64xf32>
    %119 = tpu.matmul %18, %118, %cst_120 {dimension_numbers = #tpu.dot_dimension_numbers<[1], [0], [0], [1], [0, 0, 1, 1], [], []>} : vector<4x32xbf16>, vector<32x64xbf16>, vector<4x64xf32> -> vector<4x64xf32>
    %120 = arith.addf %116, %119 : vector<4x64xf32>
    %c1_121 = arith.constant 1 : index
    %c0_122 = arith.constant 0 : index
    %c0_123 = arith.constant 0 : index
    %121 = vector.load %arg2[%c1_121, %c0_122, %c0_123] : memref<9x32x64xbf16, #tpu.memory_space<vmem>>, vector<1x32x64xbf16>
    %122 = vector.shape_cast %121 : vector<1x32x64xbf16> to vector<32x64xbf16>
    %cst_124 = arith.constant dense<0.000000e+00> : vector<4x64xf32>
    %123 = tpu.matmul %26, %122, %cst_124 {dimension_numbers = #tpu.dot_dimension_numbers<[1], [0], [0], [1], [0, 0, 1, 1], [], []>} : vector<4x32xbf16>, vector<32x64xbf16>, vector<4x64xf32> -> vector<4x64xf32>
    %124 = arith.addf %120, %123 : vector<4x64xf32>
    %c2_125 = arith.constant 2 : index
    %c0_126 = arith.constant 0 : index
    %c0_127 = arith.constant 0 : index
    %125 = vector.load %arg2[%c2_125, %c0_126, %c0_127] : memref<9x32x64xbf16, #tpu.memory_space<vmem>>, vector<1x32x64xbf16>
    %126 = vector.shape_cast %125 : vector<1x32x64xbf16> to vector<32x64xbf16>
    %cst_128 = arith.constant dense<0.000000e+00> : vector<4x64xf32>
    %127 = tpu.matmul %20, %126, %cst_128 {dimension_numbers = #tpu.dot_dimension_numbers<[1], [0], [0], [1], [0, 0, 1, 1], [], []>} : vector<4x32xbf16>, vector<32x64xbf16>, vector<4x64xf32> -> vector<4x64xf32>
    %128 = arith.addf %124, %127 : vector<4x64xf32>
    %c3_129 = arith.constant 3 : index
    %c0_130 = arith.constant 0 : index
    %c0_131 = arith.constant 0 : index
    %129 = vector.load %arg2[%c3_129, %c0_130, %c0_131] : memref<9x32x64xbf16, #tpu.memory_space<vmem>>, vector<1x32x64xbf16>
    %130 = vector.shape_cast %129 : vector<1x32x64xbf16> to vector<32x64xbf16>
    %cst_132 = arith.constant dense<0.000000e+00> : vector<4x64xf32>
    %131 = tpu.matmul %6, %130, %cst_132 {dimension_numbers = #tpu.dot_dimension_numbers<[1], [0], [0], [1], [0, 0, 1, 1], [], []>} : vector<4x32xbf16>, vector<32x64xbf16>, vector<4x64xf32> -> vector<4x64xf32>
    %132 = arith.addf %128, %131 : vector<4x64xf32>
    %c4_133 = arith.constant 4 : index
    %c0_134 = arith.constant 0 : index
    %c0_135 = arith.constant 0 : index
    %133 = vector.load %arg2[%c4_133, %c0_134, %c0_135] : memref<9x32x64xbf16, #tpu.memory_space<vmem>>, vector<1x32x64xbf16>
    %134 = vector.shape_cast %133 : vector<1x32x64xbf16> to vector<32x64xbf16>
    %cst_136 = arith.constant dense<0.000000e+00> : vector<4x64xf32>
    %135 = tpu.matmul %14, %134, %cst_136 {dimension_numbers = #tpu.dot_dimension_numbers<[1], [0], [0], [1], [0, 0, 1, 1], [], []>} : vector<4x32xbf16>, vector<32x64xbf16>, vector<4x64xf32> -> vector<4x64xf32>
    %136 = arith.addf %132, %135 : vector<4x64xf32>
    %c5_137 = arith.constant 5 : index
    %c0_138 = arith.constant 0 : index
    %c0_139 = arith.constant 0 : index
    %137 = vector.load %arg2[%c5_137, %c0_138, %c0_139] : memref<9x32x64xbf16, #tpu.memory_space<vmem>>, vector<1x32x64xbf16>
    %138 = vector.shape_cast %137 : vector<1x32x64xbf16> to vector<32x64xbf16>
    %cst_140 = arith.constant dense<0.000000e+00> : vector<4x64xf32>
    %139 = tpu.matmul %8, %138, %cst_140 {dimension_numbers = #tpu.dot_dimension_numbers<[1], [0], [0], [1], [0, 0, 1, 1], [], []>} : vector<4x32xbf16>, vector<32x64xbf16>, vector<4x64xf32> -> vector<4x64xf32>
    %140 = arith.addf %136, %139 : vector<4x64xf32>
    %c6_141 = arith.constant 6 : index
    %c0_142 = arith.constant 0 : index
    %c0_143 = arith.constant 0 : index
    %141 = vector.load %arg2[%c6_141, %c0_142, %c0_143] : memref<9x32x64xbf16, #tpu.memory_space<vmem>>, vector<1x32x64xbf16>
    %142 = vector.shape_cast %141 : vector<1x32x64xbf16> to vector<32x64xbf16>
    %cst_144 = arith.constant dense<0.000000e+00> : vector<4x64xf32>
    %143 = tpu.matmul %22, %142, %cst_144 {dimension_numbers = #tpu.dot_dimension_numbers<[1], [0], [0], [1], [0, 0, 1, 1], [], []>} : vector<4x32xbf16>, vector<32x64xbf16>, vector<4x64xf32> -> vector<4x64xf32>
    %144 = arith.addf %140, %143 : vector<4x64xf32>
    %c7_145 = arith.constant 7 : index
    %c0_146 = arith.constant 0 : index
    %c0_147 = arith.constant 0 : index
    %145 = vector.load %arg2[%c7_145, %c0_146, %c0_147] : memref<9x32x64xbf16, #tpu.memory_space<vmem>>, vector<1x32x64xbf16>
    %146 = vector.shape_cast %145 : vector<1x32x64xbf16> to vector<32x64xbf16>
    %cst_148 = arith.constant dense<0.000000e+00> : vector<4x64xf32>
    %147 = tpu.matmul %30, %146, %cst_148 {dimension_numbers = #tpu.dot_dimension_numbers<[1], [0], [0], [1], [0, 0, 1, 1], [], []>} : vector<4x32xbf16>, vector<32x64xbf16>, vector<4x64xf32> -> vector<4x64xf32>
    %148 = arith.addf %144, %147 : vector<4x64xf32>
    %c8_149 = arith.constant 8 : index
    %c0_150 = arith.constant 0 : index
    %c0_151 = arith.constant 0 : index
    %149 = vector.load %arg2[%c8_149, %c0_150, %c0_151] : memref<9x32x64xbf16, #tpu.memory_space<vmem>>, vector<1x32x64xbf16>
    %150 = vector.shape_cast %149 : vector<1x32x64xbf16> to vector<32x64xbf16>
    %cst_152 = arith.constant dense<0.000000e+00> : vector<4x64xf32>
    %151 = tpu.matmul %24, %150, %cst_152 {dimension_numbers = #tpu.dot_dimension_numbers<[1], [0], [0], [1], [0, 0, 1, 1], [], []>} : vector<4x32xbf16>, vector<32x64xbf16>, vector<4x64xf32> -> vector<4x64xf32>
    %152 = arith.addf %148, %151 : vector<4x64xf32>
    %153 = vector.broadcast %0 : vector<1x64xf32> to vector<4x64xf32>
    %154 = arith.addf %152, %153 : vector<4x64xf32>
    %cst_153 = arith.constant 0.000000e+00 : f32
    %155 = vector.broadcast %cst_153 : f32 to vector<4x64xf32>
    %156 = arith.maximumf %154, %155 : vector<4x64xf32>
    %157 = arith.maximumf %115, %156 : vector<4x64xf32>
    %cst_154 = arith.constant 0.000000e+00 : f32
    %158 = vector.broadcast %cst_154 : f32 to vector<4x64xf32>
    %c0_155 = arith.constant 0 : index
    %c0_156 = arith.constant 0 : index
    %c0_157 = arith.constant 0 : index
    %159 = vector.load %arg2[%c0_155, %c0_156, %c0_157] : memref<9x32x64xbf16, #tpu.memory_space<vmem>>, vector<1x32x64xbf16>
    %160 = vector.shape_cast %159 : vector<1x32x64xbf16> to vector<32x64xbf16>
    %cst_158 = arith.constant dense<0.000000e+00> : vector<4x64xf32>
    %161 = tpu.matmul %26, %160, %cst_158 {dimension_numbers = #tpu.dot_dimension_numbers<[1], [0], [0], [1], [0, 0, 1, 1], [], []>} : vector<4x32xbf16>, vector<32x64xbf16>, vector<4x64xf32> -> vector<4x64xf32>
    %162 = arith.addf %158, %161 : vector<4x64xf32>
    %c1_159 = arith.constant 1 : index
    %c0_160 = arith.constant 0 : index
    %c0_161 = arith.constant 0 : index
    %163 = vector.load %arg2[%c1_159, %c0_160, %c0_161] : memref<9x32x64xbf16, #tpu.memory_space<vmem>>, vector<1x32x64xbf16>
    %164 = vector.shape_cast %163 : vector<1x32x64xbf16> to vector<32x64xbf16>
    %cst_162 = arith.constant dense<0.000000e+00> : vector<4x64xf32>
    %165 = tpu.matmul %20, %164, %cst_162 {dimension_numbers = #tpu.dot_dimension_numbers<[1], [0], [0], [1], [0, 0, 1, 1], [], []>} : vector<4x32xbf16>, vector<32x64xbf16>, vector<4x64xf32> -> vector<4x64xf32>
    %166 = arith.addf %162, %165 : vector<4x64xf32>
    %c2_163 = arith.constant 2 : index
    %c0_164 = arith.constant 0 : index
    %c0_165 = arith.constant 0 : index
    %167 = vector.load %arg2[%c2_163, %c0_164, %c0_165] : memref<9x32x64xbf16, #tpu.memory_space<vmem>>, vector<1x32x64xbf16>
    %168 = vector.shape_cast %167 : vector<1x32x64xbf16> to vector<32x64xbf16>
    %cst_166 = arith.constant dense<0.000000e+00> : vector<4x64xf32>
    %169 = tpu.matmul %28, %168, %cst_166 {dimension_numbers = #tpu.dot_dimension_numbers<[1], [0], [0], [1], [0, 0, 1, 1], [], []>} : vector<4x32xbf16>, vector<32x64xbf16>, vector<4x64xf32> -> vector<4x64xf32>
    %170 = arith.addf %166, %169 : vector<4x64xf32>
    %c3_167 = arith.constant 3 : index
    %c0_168 = arith.constant 0 : index
    %c0_169 = arith.constant 0 : index
    %171 = vector.load %arg2[%c3_167, %c0_168, %c0_169] : memref<9x32x64xbf16, #tpu.memory_space<vmem>>, vector<1x32x64xbf16>
    %172 = vector.shape_cast %171 : vector<1x32x64xbf16> to vector<32x64xbf16>
    %cst_170 = arith.constant dense<0.000000e+00> : vector<4x64xf32>
    %173 = tpu.matmul %14, %172, %cst_170 {dimension_numbers = #tpu.dot_dimension_numbers<[1], [0], [0], [1], [0, 0, 1, 1], [], []>} : vector<4x32xbf16>, vector<32x64xbf16>, vector<4x64xf32> -> vector<4x64xf32>
    %174 = arith.addf %170, %173 : vector<4x64xf32>
    %c4_171 = arith.constant 4 : index
    %c0_172 = arith.constant 0 : index
    %c0_173 = arith.constant 0 : index
    %175 = vector.load %arg2[%c4_171, %c0_172, %c0_173] : memref<9x32x64xbf16, #tpu.memory_space<vmem>>, vector<1x32x64xbf16>
    %176 = vector.shape_cast %175 : vector<1x32x64xbf16> to vector<32x64xbf16>
    %cst_174 = arith.constant dense<0.000000e+00> : vector<4x64xf32>
    %177 = tpu.matmul %8, %176, %cst_174 {dimension_numbers = #tpu.dot_dimension_numbers<[1], [0], [0], [1], [0, 0, 1, 1], [], []>} : vector<4x32xbf16>, vector<32x64xbf16>, vector<4x64xf32> -> vector<4x64xf32>
    %178 = arith.addf %174, %177 : vector<4x64xf32>
    %c5_175 = arith.constant 5 : index
    %c0_176 = arith.constant 0 : index
    %c0_177 = arith.constant 0 : index
    %179 = vector.load %arg2[%c5_175, %c0_176, %c0_177] : memref<9x32x64xbf16, #tpu.memory_space<vmem>>, vector<1x32x64xbf16>
    %180 = vector.shape_cast %179 : vector<1x32x64xbf16> to vector<32x64xbf16>
    %cst_178 = arith.constant dense<0.000000e+00> : vector<4x64xf32>
    %181 = tpu.matmul %16, %180, %cst_178 {dimension_numbers = #tpu.dot_dimension_numbers<[1], [0], [0], [1], [0, 0, 1, 1], [], []>} : vector<4x32xbf16>, vector<32x64xbf16>, vector<4x64xf32> -> vector<4x64xf32>
    %182 = arith.addf %178, %181 : vector<4x64xf32>
    %c6_179 = arith.constant 6 : index
    %c0_180 = arith.constant 0 : index
    %c0_181 = arith.constant 0 : index
    %183 = vector.load %arg2[%c6_179, %c0_180, %c0_181] : memref<9x32x64xbf16, #tpu.memory_space<vmem>>, vector<1x32x64xbf16>
    %184 = vector.shape_cast %183 : vector<1x32x64xbf16> to vector<32x64xbf16>
    %cst_182 = arith.constant dense<0.000000e+00> : vector<4x64xf32>
    %185 = tpu.matmul %30, %184, %cst_182 {dimension_numbers = #tpu.dot_dimension_numbers<[1], [0], [0], [1], [0, 0, 1, 1], [], []>} : vector<4x32xbf16>, vector<32x64xbf16>, vector<4x64xf32> -> vector<4x64xf32>
    %186 = arith.addf %182, %185 : vector<4x64xf32>
    %c7_183 = arith.constant 7 : index
    %c0_184 = arith.constant 0 : index
    %c0_185 = arith.constant 0 : index
    %187 = vector.load %arg2[%c7_183, %c0_184, %c0_185] : memref<9x32x64xbf16, #tpu.memory_space<vmem>>, vector<1x32x64xbf16>
    %188 = vector.shape_cast %187 : vector<1x32x64xbf16> to vector<32x64xbf16>
    %cst_186 = arith.constant dense<0.000000e+00> : vector<4x64xf32>
    %189 = tpu.matmul %24, %188, %cst_186 {dimension_numbers = #tpu.dot_dimension_numbers<[1], [0], [0], [1], [0, 0, 1, 1], [], []>} : vector<4x32xbf16>, vector<32x64xbf16>, vector<4x64xf32> -> vector<4x64xf32>
    %190 = arith.addf %186, %189 : vector<4x64xf32>
    %c8_187 = arith.constant 8 : index
    %c0_188 = arith.constant 0 : index
    %c0_189 = arith.constant 0 : index
    %191 = vector.load %arg2[%c8_187, %c0_188, %c0_189] : memref<9x32x64xbf16, #tpu.memory_space<vmem>>, vector<1x32x64xbf16>
    %192 = vector.shape_cast %191 : vector<1x32x64xbf16> to vector<32x64xbf16>
    %cst_190 = arith.constant dense<0.000000e+00> : vector<4x64xf32>
    %193 = tpu.matmul %32, %192, %cst_190 {dimension_numbers = #tpu.dot_dimension_numbers<[1], [0], [0], [1], [0, 0, 1, 1], [], []>} : vector<4x32xbf16>, vector<32x64xbf16>, vector<4x64xf32> -> vector<4x64xf32>
    %194 = arith.addf %190, %193 : vector<4x64xf32>
    %195 = vector.broadcast %0 : vector<1x64xf32> to vector<4x64xf32>
    %196 = arith.addf %194, %195 : vector<4x64xf32>
    %cst_191 = arith.constant 0.000000e+00 : f32
    %197 = vector.broadcast %cst_191 : f32 to vector<4x64xf32>
    %198 = arith.maximumf %196, %197 : vector<4x64xf32>
    %199 = arith.maximumf %157, %198 : vector<4x64xf32>
    %c0_192 = arith.constant 0 : index
    %c0_193 = arith.constant 0 : index
    %c0_194 = arith.constant 0 : index
    %200 = vector.load %arg4[%c0_192, %c0_193, %c0_194] : memref<1x4x64xf32, #tpu.memory_space<vmem>>, vector<1x4x64xf32>
    %201 = vector.shape_cast %200 : vector<1x4x64xf32> to vector<4x64xf32>
    %202 = vector.shape_cast %199 : vector<4x64xf32> to vector<1x4x64xf32>
    tpu.vector_store %arg4[%c0_192, %c0_193, %c0_194], %202 {strides = array<i32>} : memref<1x4x64xf32, #tpu.memory_space<vmem>>, vector<1x4x64xf32>,
    return
  }
  func.func @transform_0(%arg0: i32) -> (i32, i32, i32) {
    %c0_i32 = arith.constant 0 : i32
    %c0_i32_0 = arith.constant 0 : i32
    %c0_i32_1 = arith.constant 0 : i32
    return %arg0, %c0_i32, %c0_i32_0 : i32, i32, i32
  }
  func.func @transform_1(%arg0: i32) -> (i32, i32, i32) {
    %c0_i32 = arith.constant 0 : i32
    %c0_i32_0 = arith.constant 0 : i32
    %c0_i32_1 = arith.constant 0 : i32
    %c0_i32_2 = arith.constant 0 : i32
    return %c0_i32, %c0_i32_0, %c0_i32_1 : i32, i32, i32
  }
  func.func @transform_2(%arg0: i32) -> (i32, i32) {
    %c0_i32 = arith.constant 0 : i32
    %c0_i32_0 = arith.constant 0 : i32
    %c0_i32_1 = arith.constant 0 : i32
    return %c0_i32, %c0_i32_0 : i32, i32
  }
  func.func @transform_3(%arg0: i32) -> (i32, i32, i32) {
    %c0_i32 = arith.constant 0 : i32
    %c0_i32_0 = arith.constant 0 : i32
    %c0_i32_1 = arith.constant 0 : i32
    return %arg0, %c0_i32, %c0_i32_0 : i32, i32, i32
  }
}

module attributes {stable_mosaic.version = 11 : i64} {
  func.func @_mlp_kernel(%arg0: i32, %arg1: memref<8x256xf32, #tpu.memory_space<vmem>>, %arg2: memref<256x32xf32, #tpu.memory_space<vmem>>, %arg3: memref<1x32xf32, #tpu.memory_space<vmem>>, %arg4: memref<32x10xf32, #tpu.memory_space<vmem>>, %arg5: memref<1x10xf32, #tpu.memory_space<vmem>>, %arg6: memref<8x10xf32, #tpu.memory_space<vmem>>) attributes {dimension_semantics = [#tpu.dimension_semantics<parallel>], iteration_bounds = array<i64: 1>, scalar_prefetch = 0 : i64, scratch_operands = 0 : i64, tpu.core_type = #tpu.core_type<tc>, window_params = [{transform_indices = @transform_0, window_bounds = array<i64: 8, 256>}, {pipeline_mode = #tpu.pipeline_mode<synchronous>, transform_indices = @transform_1, window_bounds = array<i64: 256, 32>}, {pipeline_mode = #tpu.pipeline_mode<synchronous>, transform_indices = @transform_2, window_bounds = array<i64: 1, 32>}, {pipeline_mode = #tpu.pipeline_mode<synchronous>, transform_indices = @transform_3, window_bounds = array<i64: 32, 10>}, {pipeline_mode = #tpu.pipeline_mode<synchronous>, transform_indices = @transform_4, window_bounds = array<i64: 1, 10>}, {transform_indices = @transform_5, window_bounds = array<i64: 8, 10>}]} {
    %c0 = arith.constant 0 : index
    %c0_0 = arith.constant 0 : index
    %0 = vector.load %arg1[%c0, %c0_0] : memref<8x256xf32, #tpu.memory_space<vmem>>, vector<8x256xf32>
    %c0_1 = arith.constant 0 : index
    %c0_2 = arith.constant 0 : index
    %1 = vector.load %arg2[%c0_1, %c0_2] : memref<256x32xf32, #tpu.memory_space<vmem>>, vector<256x32xf32>
    %cst = arith.constant dense<0.000000e+00> : vector<8x32xf32>
    %2 = tpu.matmul %0, %1, %cst {dimension_numbers = #tpu.dot_dimension_numbers<[1], [0], [0], [1], [0, 0, 1, 1], [], []>} : vector<8x256xf32>, vector<256x32xf32>, vector<8x32xf32> -> vector<8x32xf32>
    %c0_3 = arith.constant 0 : index
    %c0_4 = arith.constant 0 : index
    %3 = vector.load %arg3[%c0_3, %c0_4] : memref<1x32xf32, #tpu.memory_space<vmem>>, vector<1x32xf32>
    %4 = vector.broadcast %3 : vector<1x32xf32> to vector<8x32xf32>
    %5 = arith.addf %2, %4 : vector<8x32xf32>
    %cst_5 = arith.constant 0.000000e+00 : f32
    %6 = vector.broadcast %cst_5 : f32 to vector<8x32xf32>
    %7 = arith.maximumf %5, %6 : vector<8x32xf32>
    %c0_6 = arith.constant 0 : index
    %c0_7 = arith.constant 0 : index
    %8 = vector.load %arg4[%c0_6, %c0_7] : memref<32x10xf32, #tpu.memory_space<vmem>>, vector<32x10xf32>
    %cst_8 = arith.constant dense<0.000000e+00> : vector<8x10xf32>
    %9 = tpu.matmul %7, %8, %cst_8 {dimension_numbers = #tpu.dot_dimension_numbers<[1], [0], [0], [1], [0, 0, 1, 1], [], []>} : vector<8x32xf32>, vector<32x10xf32>, vector<8x10xf32> -> vector<8x10xf32>
    %c0_9 = arith.constant 0 : index
    %c0_10 = arith.constant 0 : index
    %10 = vector.load %arg5[%c0_9, %c0_10] : memref<1x10xf32, #tpu.memory_space<vmem>>, vector<1x10xf32>
    %11 = vector.broadcast %10 : vector<1x10xf32> to vector<8x10xf32>
    %12 = arith.addf %9, %11 : vector<8x10xf32>
    %c0_11 = arith.constant 0 : index
    %c0_12 = arith.constant 0 : index
    %13 = vector.load %arg6[%c0_11, %c0_12] : memref<8x10xf32, #tpu.memory_space<vmem>>, vector<8x10xf32>
    tpu.vector_store %arg6[%c0_11, %c0_12], %12 {strides = array<i32>} : memref<8x10xf32, #tpu.memory_space<vmem>>, vector<8x10xf32>,
    return
  }
  func.func @transform_0(%arg0: i32) -> (i32, i32) {
    %c0_i32 = arith.constant 0 : i32
    %c0_i32_0 = arith.constant 0 : i32
    return %arg0, %c0_i32 : i32, i32
  }
  func.func @transform_1(%arg0: i32) -> (i32, i32) {
    %c0_i32 = arith.constant 0 : i32
    %c0_i32_0 = arith.constant 0 : i32
    %c0_i32_1 = arith.constant 0 : i32
    return %c0_i32, %c0_i32_0 : i32, i32
  }
  func.func @transform_2(%arg0: i32) -> (i32, i32) {
    %c0_i32 = arith.constant 0 : i32
    %c0_i32_0 = arith.constant 0 : i32
    %c0_i32_1 = arith.constant 0 : i32
    return %c0_i32, %c0_i32_0 : i32, i32
  }
  func.func @transform_3(%arg0: i32) -> (i32, i32) {
    %c0_i32 = arith.constant 0 : i32
    %c0_i32_0 = arith.constant 0 : i32
    %c0_i32_1 = arith.constant 0 : i32
    return %c0_i32, %c0_i32_0 : i32, i32
  }
  func.func @transform_4(%arg0: i32) -> (i32, i32) {
    %c0_i32 = arith.constant 0 : i32
    %c0_i32_0 = arith.constant 0 : i32
    %c0_i32_1 = arith.constant 0 : i32
    return %c0_i32, %c0_i32_0 : i32, i32
  }
  func.func @transform_5(%arg0: i32) -> (i32, i32) {
    %c0_i32 = arith.constant 0 : i32
    %c0_i32_0 = arith.constant 0 : i32
    return %arg0, %c0_i32 : i32, i32
  }
}

</mosaic_0001>

<bundles_post_ra>
// kernel: cnn_forward.5
= control target key start
LH: loop header
LB: loop body
LE: loop exit
PB: predicated region body
PF: predicated region fallthrough
CT: control target
= control target key end

     0   :  { %10 = vsyncpa [#allocation3], 0  ;;  %vm125_vm0 = vcmask 261120   ;;  %vm149_vm1 = vcmask 80896   ;;  %s363_s0 = inlined_call_operand.vmem [shape: f32[2,256], index: 0, kind: input, shape index: {}]   ;;  %s364_s1 = inlined_call_operand.vmem [shape: f32[256,32], index: 1, kind: input, shape index: {}]   ;;  %s365_s2 = inlined_call_operand.vmem [shape: f32[1,32], index: 2, kind: input, shape index: {}]   ;;  %s366_s3 = inlined_call_operand.vmem [shape: f32[32,10], index: 3, kind: input, shape index: {}]   ;;  %s367_s4 = inlined_call_operand.vmem [shape: f32[1,10], index: 4, kind: input, shape index: {}]   ;;  %s368_s5 = inlined_call_operand.hbm [shape: f32[2,10], index: 5, kind: output, shape index: {}]  }
   0x1   :  { %v40_v0 = vld [vmem:[%s364_s1 + $0x78] sm:$0xff]  ;;  %v39_v1 = vld [vmem:[%s364_s1 + $0x70] sm:$0xff]  ;;  %v38_v4 = vld [vmem:[%s364_s1 + $0x68] sm:$0xff] }
   0x2   :  { %76 = vmatpush.msra.mxu0 %v40_v0  ;;  %v56_v2 = vld [vmem:[%s364_s1 + $0xf8] sm:$0xff]  ;;  %v55_v3 = vld [vmem:[%s364_s1 + $0xf0] sm:$0xff]  ;;  %v54_v5 = vld [vmem:[%s364_s1 + $0xe8] sm:$0xff] }
   0x3   :  { %96 = vmatpush.msra.mxu1 %v56_v2  ;;  %v37_v6 = vld [vmem:[%s364_s1 + $0x60] sm:$0xff]  ;;  %v36_v8 = vld [vmem:[%s364_s1 + $0x58] sm:$0xff]  ;;  %v35_v10 = vld [vmem:[%s364_s1 + $0x50] sm:$0xff] }
   0x4   :  { %77 = vmatpush.msra.mxu0 %v39_v1  ;;  %v53_v7 = vld [vmem:[%s364_s1 + $0xe0] sm:$0xff]  ;;  %v52_v9 = vld [vmem:[%s364_s1 + $0xd8] sm:$0xff]  ;;  %v51_v11 = vld [vmem:[%s364_s1 + $0xd0] sm:$0xff] }
   0x5   :  { %97 = vmatpush.msra.mxu1 %v55_v3  ;;  %v34_v12 = vld [vmem:[%s364_s1 + $0x48] sm:$0xff]  ;;  %v33_v13 = vld [vmem:[%s364_s1 + $0x40] sm:$0xff]  ;;  %v32_v20 = vld [vmem:[%s364_s1 + $0x38] sm:$0xff] }
   0x6   :  { %78 = vmatpush.msra.mxu0 %v38_v4  ;;  %v21_v14 = vld [vmem:[%s363_s0] sm:$0xf]  ;;  %v50_v15 = vld [vmem:[%s364_s1 + $0xc8] sm:$0xff]  ;;  %v22_v16 = vld [vmem:[%s363_s0 + $0x4] sm:$0xf] }
   0x7   :  { %98 = vmatpush.msra.mxu1 %v54_v5  ;;  %v23_v17 = vld [vmem:[%s363_s0 + $0x8] sm:$0xf]  ;;  %v24_v18 = vld [vmem:[%s363_s0 + $0xc] sm:$0xf]  ;;  %65 = vst [vmem:[#allocation1] ss:$4 sm:$0xff] %v21_v14 }
   0x8   :  { %79 = vmatpush.msra.mxu0 %v37_v6  ;;  %v49_v19 = vld [vmem:[%s364_s1 + $0xc0] sm:$0xff]  ;;  %67 = vst [vmem:[#allocation1 + $0x1] ss:$4 sm:$0xff] %v22_v16  ;;  %v48_v21 = vld [vmem:[%s364_s1 + $0xb8] sm:$0xff]  ;;  %v31_v22 = vld [vmem:[%s364_s1 + $0x30] sm:$0xff] }
   0x9   :  { %99 = vmatpush.msra.mxu1 %v53_v7  ;;  %69 = vst [vmem:[#allocation1 + $0x2] ss:$4 sm:$0xff] %v23_v17  ;;  %v47_v23 = vld [vmem:[%s364_s1 + $0xb0] sm:$0xff]  ;;  %v30_v24 = vld [vmem:[%s364_s1 + $0x28] sm:$0xff]  ;;  %v29_v26 = vld [vmem:[%s364_s1 + $0x20] sm:$0xff] }
   0xa   :  { %80 = vmatpush.msra.mxu0 %v36_v8  ;;  %71 = vst [vmem:[#allocation1 + $0x3] ss:$4 sm:$0xff] %v24_v18  ;;  %v46_v25 = vld [vmem:[%s364_s1 + $0xa8] sm:$0xff]  ;;  %v45_v27 = vld [vmem:[%s364_s1 + $0xa0] sm:$0xff]  ;;  %v28_v28 = vld [vmem:[%s364_s1 + $0x18] sm:$0xff] }
   0xb   :  { %100 = vmatpush.msra.mxu1 %v52_v9  ;;  %v44_v29 = vld [vmem:[%s364_s1 + $0x98] sm:$0xff]  ;;  %v27_v30 = vld [vmem:[%s364_s1 + $0x10] sm:$0xff]  ;;  %v26_v32 = vld [vmem:[%s364_s1 + $0x8] sm:$0xff] }
   0xc   :  { %81 = vmatpush.msra.mxu0 %v35_v10  ;;  %v43_v31 = vld [vmem:[%s364_s1 + $0x90] sm:$0xff]  ;;  %v42_v33 = vld [vmem:[%s364_s1 + $0x88] sm:$0xff]  ;;  %v25_v34 = vld [vmem:[%s364_s1] sm:$0xff] }
   0xd   :  { %101 = vmatpush.msra.mxu1 %v51_v11  ;;  %v41_v36 = vld [vmem:[%s364_s1 + $0x80] sm:$0xff]  ;;  %v120_v38 = vld [vmem:[%s366_s3 + $0x18] sm:$0xff]  ;;  %v119_v39 = vld [vmem:[%s366_s3 + $0x10] sm:$0xff] }
   0xe   :  { %82 = vmatpush.msra.mxu0 %v34_v12  ;;  %141 = vmatpush.msra.mxu2 %v120_v38  ;;  %v118_v40 = vld [vmem:[%s366_s3 + $0x8] sm:$0xff]  ;;  %v117_v41 = vld [vmem:[%s366_s3] sm:$0xff] }
   0xf   :  { %102 = vmatpush.msra.mxu1 %v50_v15  ;;  %v173_v42 = vld [vmem:[%s365_s2] ss:$0 sm:$0xff] }
  0x10   :  { %83 = vmatpush.msra.mxu0 %v33_v13  ;;  %142 = vmatpush.msra.mxu2 %v119_v39  ;;  %v174_v48 = vld [vmem:[%s367_s4] ss:$0 sm:$0xff] }
  0x11   :  { %103 = vmatpush.msra.mxu1 %v49_v19  ;;  %v72_v35 = vld.sshfl [vmem:[#allocation1] sm:$0xff pattern:$0x73625140]  ;;  %v73_v37 = vld.sshfl [vmem:[#allocation1 + $0x8] sm:$0xff pattern:$0x73625140] }
  0x12   :  { %84 = vmatpush.msra.mxu0 %v32_v20  ;;  %143 = vmatpush.msra.mxu2 %v118_v40 }
  0x13   :  { %104 = vmatpush.msra.mxu1 %v48_v21 }
  0x14   :  { %85 = vmatpush.msra.mxu0 %v31_v22  ;;  %144 = vmatpush.msra.mxu2 %v117_v41 }
  0x15   :  { %105 = vmatpush.msra.mxu1 %v47_v23 }
  0x16   :  { %86 = vmatpush.msra.mxu0 %v30_v24 }
  0x17   :  { %106 = vmatpush.msra.mxu1 %v46_v25 }
  0x18   :  { %87 = vmatpush.msra.mxu0 %v29_v26 }
  0x19   :  { %107 = vmatpush.msra.mxu1 %v45_v27 }
  0x1a   :  { %88 = vmatpush.msra.mxu0 %v28_v28 }
  0x1b   :  { %108 = vmatpush.msra.mxu1 %v44_v29 }
  0x1c   :  { %89 = vmatpush.msra.mxu0 %v27_v30 }
  0x1d   :  { %109 = vmatpush.msra.mxu1 %v43_v31 }
  0x1e   :  { %90 = vmatpush.msra.mxu0 %v26_v32 }
  0x1f   :  { %110 = vmatpush.msra.mxu1 %v42_v33 }
  0x20   :  { %91 = vmatpush.msra.mxu0 %v25_v34 }
  0x21   :  { %92 = vmatmul.f32.vlgmr.msra.gmra.mxu0 %v72_v35  ;;  %111 = vmatpush.msra.mxu1 %v41_v36 }
  0x22   :  { %112 = vmatmul.f32.vlgmr.msra.gmra.mxu1 %v73_v37 }
  0x9e   :  { %v93_v43 = vpop.f32.mrf.mxu0 }
  0x9f   :  { %v94_v44 = vadd.f32 %v173_v42, %v93_v43  ;;  %v113_v45 = vpop.f32.mrf.mxu1 }
  0xa1   :  { %v114_v46 = vadd.f32 %v113_v45, %v94_v44 }
  0xa3   :  { %v116_v47 = vmax.f32 %v114_v46, 0.0 }
  0xa5   :  { %169 = vmatmul.msk.f32.vlgmr.msra.gmra.mxu2 %vm125_vm0, %v116_v47 }
 0x128   :  { %v146_v49 = vpop.f32.mrf.mxu2 }
 0x129   :  { %v147_v50 = vadd.f32 %v174_v48, %v146_v49 }
 0x12b   :  { %150 = vst.msk [vmem:[#allocation2] sm:$0xff] %vm149_vm1, %v147_v50 }
 0x12c   :  { %154 = vsyncadd [#allocation3], 96  ;;  %s157_s2 = sshll.u32 %s368_s5, 4  ;;  %s201_s25 = smov [#allocation2]   ;;  %s158_s2 = int_to_ptr.hbm [resolvable:$true] %s157_s2 }
 0x12d   :  { %s155_s26 = sshll.u32 %s201_s25, 4  ;;  %s202_s27 = smov 32   ;;  %s156_s26 = int_to_ptr.vmem [resolvable:$true] %s155_s26 }
 0x12e   :  { %s203_s28 = smov 2  }
 0x12f   :  { %163 = dma.vmem_to_hbm [thread:$0]  %s156_s26, 32, %s158_s2, [#allocation3], %s202_s27, %s202_s27, %s203_s28  }
 0x130   :  { %199 = dma.done.wait [#allocation3], 128  }
 0x131   :  { %200 = vsyncadd [#allocation3], 4294967168 }
 0x132   :  { %168 = vsyncpa [#allocation3], 1 }

// kernel: cnn_forward.3
= control target key start
LH: loop header
LB: loop body
LE: loop exit
PB: predicated region body
PF: predicated region fallthrough
CT: control target
= control target key end

     0   :  { %s1236_s12 = smov 0   ;;  %s1517_s0 = inlined_call_operand.vmem [shape: bf16[8,9,36], index: 0, kind: input, shape index: {}]   ;;  %s1518_s1 = inlined_call_operand.vmem [shape: bf16[9,32,64], index: 1, kind: input, shape index: {}]   ;;  %s1519_s2 = inlined_call_operand.vmem [shape: f32[1,64], index: 2, kind: input, shape index: {}]   ;;  %s1520_s3 = inlined_call_operand.vmem [shape: f32[2,8,64], index: 3, kind: output, shape index: {}]  }
   0x1 LB: > { %s1242_s13 = sadd.s32 4294967295, %s1213_s12   ;;  %p1025_p0 = scmp.ge.s32.totalorder %s1213_s12, 1  ;;  %s1213_s12 = sphi %s1236_s12, %s13_s12  }
   0x2   : > { %p139_p1 = scmp.lt.s32.totalorder %s1213_s12, 3 }
   0x4   : > { %p140_p2 = pnand %p1025_p0, %p139_p1 }
   0x5   : > { %s1026_s14 = sshll.u32 (!%p140_p2), %s1242_s13, 2  ;;  %s1215_s20 = smov (!%p140_p2), 124  }
   0x6   : > { %143 = sbr.rel (%p140_p2) target bundleno = 407 (0x197), region = 32  ;;  %p164_p3 = scmp.lt.s32.totalorder (!%p140_p2), %s1026_s14, 7 }
   0x7   : > { %p170_p4 = scmp.lt.s32.totalorder (!%p140_p2), %s1242_s13, 1 }
   0xb   : > { %v1250_v0 = vld [vmem:[%s1518_s1 + $0x18] sm:$0xff]  ;;  %v1260_v2 = vld [vmem:[%s1518_s1 + $0x8] sm:$0xff]  ;;  %v1266_v3 = vld [vmem:[%s1518_s1 + $0x10] sm:$0xff]  ;;  %s1522_s14 = smov (!%p164_p3, %s1026_s14), 7  ;;  %vm208_vm0 = vcmask 261120   ;;  %s1524_s13 = smov (!%p170_p4, %s1242_s13), 1 }
   0xc   : > { %v1255_v1 = vld [vmem:[%s1518_s1 + $0x38] sm:$0xff]  ;;  %218 = vmatpush.bf16.msra.mxu0 %v1250_v0  ;;  %v1272_v4 = vld [vmem:[%s1518_s1 + $0x30] sm:$0xff]  ;;  %v1277_v5 = vld [vmem:[%s1518_s1 + $0x48] sm:$0xff]  ;;  %246 = vmatpush.bf16.msra.mxu1 %v1260_v2  ;;  %s1178_s6 = sshll.u32 %s1522_s14, 3  ;;  %vm966_vm1 = vcmask 523264  }
   0xd   : > { %318 = vmatpush.bf16.msra.mxu3 %v1255_v1  ;;  %v1283_v6 = vld [vmem:[%s1518_s1] sm:$0xff]  ;;  %v1288_v7 = vld [vmem:[%s1518_s1 + $0x28] sm:$0xff]  ;;  %v1293_v8 = vld [vmem:[%s1518_s1 + $0x78] sm:$0xff]  ;;  %s168_s9 = scalar_lea.vmem %s1517_s0, %s1178_s6  ;;  %s1029_s6 = sshll.u32 %s1524_s13, 3 }
   0xe   : > { %284 = vmatpush.bf16.msra.mxu2 %v1288_v7  ;;  %v1304_v9 = vld [vmem:[%s1518_s1 + $0x40] sm:$0xff]  ;;  %v1309_v10 = vld [vmem:[%s1518_s1 + $0x70] sm:$0xff]  ;;  %v1320_v17 = vld [vmem:[%s168_s9 + $0x8] sm:$0xf] }
   0xf   : > { %v1314_v11 = vld [vmem:[%s1518_s1 + $0x20] sm:$0xff]  ;;  %v1316_v14 = vld [vmem:[%s168_s9 + $0x10] sm:$0xf]  ;;  %v1031_v18 = vld [vmem:[%s168_s9 + $0xc] sm:$0x1]  ;;  %v450_v20 = vunpack.c.l.b16 %v1320_v17 }
  0x10   : > { %219 = vmatpush.bf16.msra.mxu0 %v1266_v3  ;;  %v176_v12 = vld [vmem:[%s168_s9] sm:$0xf]  ;;  %v177_v13 = vld [vmem:[%s168_s9 + $0x4] sm:$0x1]  ;;  %247 = vmatpush.bf16.msra.mxu1 %v1283_v6  ;;  %v1322_v19 = vld [vmem:[%s168_s9 + $0x18] sm:$0xf]  ;;  %v451_v21 = vunpack.c.l.b16 %v1031_v18  ;;  %v366_v29 = vunpack.c.l.b16 %v1316_v14 }
  0x11   : > { %319 = vmatpush.bf16.msra.mxu3 %v1272_v4  ;;  %v259_v15 = vunpack.c.l.b16 %v176_v12  ;;  %v405_v16 = vunpack.c.l.b16 %v177_v13  ;;  %v1035_v22 = vld [vmem:[%s168_s9 + $0x1c] sm:$0x1]  ;;  %v605_v23 = vunpack.c.l.b16 %v1322_v19  ;;  %v1033_v24 = vld [vmem:[%s168_s9 + $0x14] sm:$0x1]  ;;  %v1334_v25 = vld [vmem:[%s1518_s1 + $0x88] sm:$0xff]  ;;  %v556_v47 = vpack.c.b16 %v450_v20, %v450_v20  ;;  %s173_s9 = scalar_lea.vmem %s1520_s3, %s1029_s6 }
  0x12   : > { %v786_v28 = vunpack.c.l.b16 %v1035_v22  ;;  %285 = vmatpush.bf16.msra.mxu2 %v1314_v11  ;;  %v452_v30 = vpack.c.b16 %v451_v21, %v450_v20  ;;  %v759_v32 = vunpack.c.l.b16 %v1033_v24  ;;  %v367_v42 = vpack.c.b16 %v366_v29, %v366_v29  ;;  %v1367_v49 = vld [vmem:[%s1518_s1 + $0x58] sm:$0xff]  ;;  %v1372_v50 = vld [vmem:[%s1518_s1 + $0x68] sm:$0xff]  ;;  %v1377_v51 = vld [vmem:[%s1518_s1 + $0x80] sm:$0xff] }
  0x13   : > { %1048 = vmatmul.msk.bf16.vlgmr.msra.gmra.mxu0 %vm208_vm0, %v1320_v17  ;;  %v260_v26 = vpack.c.b16 %v259_v15, %v259_v15  ;;  %v406_v27 = vpack.c.b16 %v405_v16, %v259_v15  ;;  %1057 = vmatmul.msk.bf16.vlgmr.msra.gmra.mxu1 %vm208_vm0, %v176_v12  ;;  %v606_v31 = vpack.c.b16 %v605_v23, %v605_v23  ;;  %v1383_v52 = vld [vmem:[%s1518_s1 + $0x50] sm:$0xff]  ;;  %v1399_v57 = vld [vmem:[%s1518_s1 + $0x60] sm:$0xff] }
  0x14   : > { %352 = vmatpush.bf16.msrb.mxu0 %v1277_v5  ;;  %1083 = vmatmul.msk.bf16.vlgmr.msra.gmra.mxu3 %vm208_vm0, %v1316_v14  ;;  %v787_v35 = vpack.c.b16 %v786_v28, %v605_v23  ;;  %v454_v36 = vshrl.u32 %v452_v30, 16  ;;  %v456_v37 = vshll.u32 %v452_v30, 16  ;;  %v760_v38 = vpack.c.b16 %v759_v32, %v366_v29 }
  0x15   : > { %481 = vmatpush.bf16.msrb.mxu3 %v1293_v8  ;;  %261 = vrot.lane.b32.xlu0 %v260_v26, %s1215_s20  ;;  %v408_v33 = vshrl.u32 %v406_v27, 16  ;;  %v410_v34 = vshll.u32 %v406_v27, 16 }
  0x16   : > { %607 = vrot.lane.b32.xlu2 %v606_v31, %s1215_s20  ;;  %v458_v40 = vrot.slane %v456_v37, 1  ;;  %v764_v43 = vshll.u32 %v760_v38, 16  ;;  %v762_v45 = vshrl.u32 %v760_v38, 16  ;;  %391 = vmatpush.bf16.msrb.mxu1 %v1367_v49  ;;  %v791_v53 = vshll.u32 %v787_v35, 16 }
  0x17   : > { %v412_v39 = vrot.slane %v410_v34, 1  ;;  %435 = vmatpush.bf16.msrb.mxu2 %v1372_v50  ;;  %v789_v54 = vshrl.u32 %v787_v35, 16 }
  0x18   : > { %353 = vmatpush.bf16.msrb.mxu0 %v1304_v9  ;;  %v1347_v44 = vor.u32 %v458_v40, %v454_v36  ;;  %v766_v46 = vrot.slane %v764_v43, 1  ;;  %v793_v55 = vrot.slane %v791_v53, 1 }
  0x19   : > { %482 = vmatpush.bf16.msrb.mxu3 %v1309_v10  ;;  %v1345_v41 = vor.u32 %v412_v39, %v408_v33 }
  0x1a   : > { %v1355_v48 = vor.u32 %v766_v46, %v762_v45  ;;  %392 = vmatpush.bf16.msrb.mxu1 %v1383_v52  ;;  %v1390_v56 = vor.u32 %v793_v55, %v789_v54 }
  0x1b   : > { %494 = vrot.lane.b32.xlu1 %v1345_v41, %s1215_s20  ;;  %436 = vmatpush.bf16.msrb.mxu2 %v1399_v57 }
  0x1c   : > { %517 = vmatpush.bf16.msra.mxu0 %v1334_v25 }
  0x1d   : > { %568 = vmatpush.bf16.msra.mxu3 %v1288_v7  ;;  %368 = vrot.lane.b32.xlu0 %v367_v42, %s1215_s20 }
  0x1e   : > { %654 = vrot.lane.b32.xlu2 %v1347_v44, %s1215_s20  ;;  %536 = vmatpush.bf16.msra.mxu1 %v1250_v0 }
  0x20   : > { %518 = vmatpush.bf16.msra.mxu0 %v1377_v51 }
  0x21   : > { %569 = vmatpush.bf16.msra.mxu3 %v1314_v11 }
  0x22   : > { %537 = vmatpush.bf16.msra.mxu1 %v1266_v3 }
  0x23   : > { %1096 = vmatmul.msk.bf16.vlgmr.msrb.gmra.mxu0 %vm208_vm0, %v1322_v19  ;;  %557 = vrot.lane.b32.xlu1 %v556_v47, %s1215_s20 }
  0x24   : > { %1135 = vmatmul.msk.bf16.vlgmr.msrb.gmra.mxu3 %vm208_vm0, %v1347_v44  ;;  %582 = vmatpush.bf16.msrb.mxu0 %v1255_v1 }
  0x25   : > { %812 = vrot.lane.b32.xlu0 %v1355_v48, %s1215_s20  ;;  %632 = vmatpush.bf16.msrb.mxu3 %v1372_v50 }
  0x28   : > { %583 = vmatpush.bf16.msrb.mxu0 %v1272_v4 }
  0x29   : > { %633 = vmatpush.bf16.msrb.mxu3 %v1399_v57 }
  0x2b   : > { %944 = vrot.lane.b32.xlu1 %v1390_v56, %s1215_s20 }
  0x70   : > { %v608_v62 = vpop.permute.xlu2 %607 }
  0x78   : > { %v655_v63 = vpop.permute.xlu2 %654 }
  0x87   : > { %v262_v58 = vpop.permute.xlu0 %261 }
  0x88   : > { %1070 = vmatmul.msk.bf16.vlgmr.msra.gmra.mxu2 %vm208_vm0, %v262_v58 }
  0x89   : > { %549 = vmatpush.bf16.msra.mxu2 %v1260_v2 }
  0x8d   : > { %v1406_v59 = vpop.permute.xlu1 %494  ;;  %550 = vmatpush.bf16.msra.mxu2 %v1283_v6 }
  0x8e   : > { %1148 = vmatmul.msk.bf16.vlgmr.msra.gmra.mxu0 %vm208_vm0, %v1406_v59 }
  0x8f   : > { %v369_v60 = vpop.permute.xlu0 %368  ;;  %646 = vmatpush.bf16.msra.mxu0 %v1293_v8 }
  0x90   : > { %1109 = vmatmul.msk.bf16.vlgmr.msrb.gmra.mxu1 %vm208_vm0, %v369_v60 }
  0x91   : > { %596 = vmatpush.bf16.msrb.mxu1 %v1277_v5 }
  0x93   : > { %647 = vmatpush.bf16.msra.mxu0 %v1309_v10 }
  0x95   : > { %v558_v61 = vpop.permute.xlu1 %557  ;;  %597 = vmatpush.bf16.msrb.mxu1 %v1304_v9 }
  0x96   : > { %1151 = vmatmul.msk.bf16.vlgmr.msra.gmra.mxu3 %vm208_vm0, %v558_v61 }
  0x97   : > { %695 = vmatpush.bf16.msra.mxu3 %v1260_v2  ;;  %v813_v13 = vpop.permute.xlu0 %812 }
  0x98   : > { %1122 = vmatmul.msk.bf16.vlgmr.msrb.gmra.mxu2 %vm208_vm0, %v1345_v41 }
  0x99   : > { %618 = vmatpush.bf16.msrb.mxu2 %v1367_v49 }
  0x9b   : > { %696 = vmatpush.bf16.msra.mxu3 %v1283_v6 }
  0x9d   : > { %619 = vmatpush.bf16.msrb.mxu2 %v1383_v52 }
  0x9e   : > { %1152 = vmatmul.msk.bf16.vlgmr.msrb.gmra.mxu0 %vm208_vm0, %v1322_v19 }
  0x9f   : > { %708 = vmatpush.bf16.msrb.mxu0 %v1288_v7 }
  0xa0   : > { %1149 = vmatmul.msk.bf16.vlgmr.msra.gmra.mxu1 %vm208_vm0, %v262_v58 }
  0xa1   : > { %665 = vmatpush.bf16.msra.mxu1 %v1334_v25 }
  0xa3   : > { %709 = vmatpush.bf16.msrb.mxu0 %v1314_v11 }
  0xa5   : > { %666 = vmatpush.bf16.msra.mxu1 %v1377_v51 }
  0xa6   : > { %1155 = vmatmul.msk.bf16.vlgmr.msrb.gmra.mxu3 %vm208_vm0, %v1347_v44 }
  0xa7   : > { %750 = vmatpush.bf16.msrb.mxu3 %v1367_v49 }
  0xa8   : > { %1150 = vmatmul.msk.bf16.vlgmr.msra.gmra.mxu2 %vm208_vm0, %v1320_v17 }
  0xa9   : > { %682 = vmatpush.bf16.msra.mxu2 %v1250_v0 }
  0xab   : > { %751 = vmatpush.bf16.msrb.mxu3 %v1383_v52 }
  0xad   : > { %683 = vmatpush.bf16.msra.mxu2 %v1266_v3 }
  0xae   : > { %1156 = vmatmul.msk.bf16.vlgmr.msra.gmra.mxu0 %vm208_vm0, %v1406_v59 }
  0xaf   : > { %777 = vmatpush.bf16.msra.mxu0 %v1372_v50 }
  0xb0   : > { %1153 = vmatmul.msk.bf16.vlgmr.msrb.gmra.mxu1 %vm208_vm0, %v369_v60 }
  0xb1   : > { %722 = vmatpush.bf16.msrb.mxu1 %v1255_v1 }
  0xb3   : > { %778 = vmatpush.bf16.msra.mxu0 %v1399_v57 }
  0xb5   : > { %723 = vmatpush.bf16.msrb.mxu1 %v1272_v4 }
  0xb6   : > { %1159 = vmatmul.msk.bf16.vlgmr.msra.gmra.mxu3 %vm208_vm0, %v1316_v14  ;;  %v945_v14 = vpop.permute.xlu1 %944 }
  0xb7   : > { %840 = vmatpush.bf16.msra.mxu3 %v1250_v0  ;;  %v221_v0 = vpop.f32.mrf.mxu0 }
  0xb8   : > { %1154 = vmatmul.msk.bf16.vlgmr.msrb.gmra.mxu2 %vm208_vm0, %v608_v62 }
  0xb9   : > { %736 = vmatpush.bf16.msrb.mxu2 %v1277_v5 }
  0xbb   : > { %841 = vmatpush.bf16.msra.mxu3 %v1266_v3  ;;  %v321_v3 = vpop.f32.mrf.mxu3 }
  0xbd   : > { %737 = vmatpush.bf16.msrb.mxu2 %v1304_v9 }
  0xbe   : > { %1160 = vmatmul.msk.bf16.vlgmr.msrb.gmra.mxu0 %vm208_vm0, %v369_v60 }
  0xbf   : > { %853 = vmatpush.bf16.msrb.mxu0 %v1260_v2  ;;  %v223_v2 = vpop.f32.mrf.mxu0 }
  0xc0   : > { %1157 = vmatmul.msk.bf16.vlgmr.msra.gmra.mxu1 %vm208_vm0, %v655_v63 }
  0xc1   : > { %804 = vmatpush.bf16.msra.mxu1 %v1293_v8 }
  0xc3   : > { %854 = vmatpush.bf16.msrb.mxu0 %v1283_v6  ;;  %v249_v6 = vpop.f32.mrf.mxu1 }
  0xc5   : > { %805 = vmatpush.bf16.msra.mxu1 %v1309_v10 }
  0xc6   : > { %1163 = vmatmul.msk.bf16.vlgmr.msrb.gmra.mxu3 %vm208_vm0, %v1406_v59 }
  0xc7   : > { %894 = vmatpush.bf16.msrb.mxu3 %v1277_v5  ;;  %v355_v5 = vpop.f32.mrf.mxu0 }
  0xc8   : > { %1158 = vmatmul.msk.bf16.vlgmr.msra.gmra.mxu2 %vm208_vm0, %v1322_v19 }
  0xc9   : > { %823 = vmatpush.bf16.msra.mxu2 %v1334_v25 }
  0xcb   : > { %895 = vmatpush.bf16.msrb.mxu3 %v1304_v9  ;;  %v250_v9 = vadd.f32 %v249_v6, %v221_v0  ;;  %v251_v12 = vpop.f32.mrf.mxu1 }
  0xcd   : > { %824 = vmatpush.bf16.msra.mxu2 %v1377_v51 }
  0xce   : > { %1164 = vmatmul.msk.bf16.vlgmr.msra.gmra.mxu0 %vm208_vm0, %v1355_v48 }
  0xcf   : > { %908 = vmatpush.bf16.msra.mxu0 %v1367_v49 }
  0xd0   : > { %1161 = vmatmul.msk.bf16.vlgmr.msrb.gmra.mxu1 %vm208_vm0, %v1345_v41 }
  0xd1   : > { %866 = vmatpush.bf16.msrb.mxu1 %v1288_v7  ;;  %v323_v7 = vpop.f32.mrf.mxu3 }
  0xd3   : > { %909 = vmatpush.bf16.msra.mxu0 %v1383_v52 }
  0xd5   : > { %867 = vmatpush.bf16.msrb.mxu1 %v1314_v11  ;;  %v357_v11 = vpop.f32.mrf.mxu0 }
  0xd6   : > { %1167 = vmatmul.msk.bf16.vlgmr.msra.gmra.mxu3 %vm208_vm0, %v369_v60 }
  0xd7   : > { %955 = vmatpush.bf16.msra.mxu3 %v1334_v25 }
  0xd8   : > { %1162 = vmatmul.msk.bf16.vlgmr.msrb.gmra.mxu2 %vm208_vm0, %v1347_v44 }
  0xd9   : > { %880 = vmatpush.bf16.msrb.mxu2 %v1255_v1  ;;  %v484_v1 = vpop.f32.mrf.mxu3 }
  0xdb   : > { %956 = vmatpush.bf16.msra.mxu3 %v1377_v51  ;;  %v1503_v51 = vld [vmem:[%s1519_s2] ss:$0 sm:$0xff] }
  0xdd   : > { %881 = vmatpush.bf16.msrb.mxu2 %v1272_v4 }
  0xde   : > { %1168 = vmatmul.msk.bf16.vlgmr.msrb.gmra.mxu0 %vm208_vm0, %v1322_v19 }
  0xe0   : > { %1165 = vmatmul.msk.bf16.vlgmr.msra.gmra.mxu1 %vm208_vm0, %v1390_v56 }
  0xe1   : > { %922 = vmatpush.bf16.msra.mxu1 %v1372_v50  ;;  %v486_v4 = vpop.f32.mrf.mxu3 }
  0xe5   : > { %923 = vmatpush.bf16.msra.mxu1 %v1399_v57 }
  0xe6   : > { %1171 = vmatmul.msk.bf16.vlgmr.msrb.gmra.mxu3 %vm208_vm0, %v1406_v59 }
  0xe8   : > { %1166 = vmatmul.msk.bf16.vlgmr.msra.gmra.mxu2 %vm208_vm0, %v813_v13 }
  0xe9   : > { %936 = vmatpush.bf16.msra.mxu2 %v1293_v8 }
  0xed   : > { %937 = vmatpush.bf16.msra.mxu2 %v1309_v10 }
  0xee   : > { %1172 = vmatmul.msk.bf16.vlgmr.msra.gmra.mxu0 %vm208_vm0, %v655_v63 }
  0xf0   : > { %1169 = vmatmul.msk.bf16.vlgmr.msrb.gmra.mxu1 %vm208_vm0, %v608_v62 }
  0xf6   : > { %1175 = vmatmul.msk.bf16.vlgmr.msra.gmra.mxu3 %vm208_vm0, %v945_v14 }
  0xf8   : > { %1170 = vmatmul.msk.bf16.vlgmr.msrb.gmra.mxu2 %vm208_vm0, %v1347_v44 }
 0x100   : > { %1173 = vmatmul.msk.bf16.vlgmr.msra.gmra.mxu1 %vm208_vm0, %v1390_v56 }
 0x108   : > { %1174 = vmatmul.msk.bf16.vlgmr.msra.gmra.mxu2 %vm208_vm0, %v813_v13 }
 0x10b   : > { %v287_v15 = vpop.f32.mrf.mxu2  ;;  %v520_v8 = vpop.f32.mrf.mxu0 }
 0x10c   : > { %v291_v16 = vadd.f32 %v287_v15, %v250_v9 }
 0x10d   : > { %v394_v10 = vpop.f32.mrf.mxu1 }
 0x10e   : > { %v325_v17 = vadd.f32 %v321_v3, %v291_v16 }
 0x110   : > { %v359_v18 = vadd.f32 %v355_v5, %v325_v17 }
 0x112   : > { %v398_v19 = vadd.f32 %v394_v10, %v359_v18 }
 0x113   : > { %v289_v20 = vpop.f32.mrf.mxu2  ;;  %v522_v21 = vpop.f32.mrf.mxu0 }
 0x115   : > { %v396_v22 = vpop.f32.mrf.mxu1 }
 0x119   : > { %v571_v23 = vpop.f32.mrf.mxu3 }
 0x11b   : > { %v438_v24 = vpop.f32.mrf.mxu2  ;;  %v585_v25 = vpop.f32.mrf.mxu0 }
 0x11c   : > { %v442_v26 = vadd.f32 %v438_v24, %v398_v19 }
 0x11d   : > { %v539_v27 = vpop.f32.mrf.mxu1 }
 0x11e   : > { %v488_v28 = vadd.f32 %v484_v1, %v442_v26 }
 0x120   : > { %v524_v29 = vadd.f32 %v520_v8, %v488_v28 }
 0x121   : > { %v573_v30 = vpop.f32.mrf.mxu3 }
 0x122   : > { %v528_v55 = vadd.f32 %v1503_v51, %v524_v29 }
 0x123   : > { %v440_v31 = vpop.f32.mrf.mxu2  ;;  %v587_v32 = vpop.f32.mrf.mxu0 }
 0x124   : > { %v529_v61 = vmax.f32 %v528_v55, 0.0 }
 0x125   : > { %v541_v33 = vpop.f32.mrf.mxu1 }
 0x129   : > { %v635_v34 = vpop.f32.mrf.mxu3 }
 0x12b   : > { %v552_v35 = vpop.f32.mrf.mxu2  ;;  %v649_v36 = vpop.f32.mrf.mxu0 }
 0x12c   : > { %v553_v37 = vadd.f32 %v552_v35, %v539_v27 }
 0x12d   : > { %v599_v38 = vpop.f32.mrf.mxu1 }
 0x12e   : > { %v575_v39 = vadd.f32 %v571_v23, %v553_v37 }
 0x130   : > { %v589_v40 = vadd.f32 %v585_v25, %v575_v39 }
 0x131   : > { %v637_v41 = vpop.f32.mrf.mxu3 }
 0x132   : > { %v603_v42 = vadd.f32 %v599_v38, %v589_v40 }
 0x133   : > { %v554_v43 = vpop.f32.mrf.mxu2  ;;  %v651_v44 = vpop.f32.mrf.mxu0 }
 0x135   : > { %v601_v45 = vpop.f32.mrf.mxu1 }
 0x139   : > { %v698_v46 = vpop.f32.mrf.mxu3 }
 0x13b   : > { %v621_v47 = vpop.f32.mrf.mxu2  ;;  %v711_v48 = vpop.f32.mrf.mxu0 }
 0x13c   : > { %v625_v49 = vadd.f32 %v621_v47, %v603_v42 }
 0x13d   : > { %v668_v50 = vpop.f32.mrf.mxu1 }
 0x13e   : > { %v639_v52 = vadd.f32 %v635_v34, %v625_v49 }
 0x140   : > { %v653_v53 = vadd.f32 %v649_v36, %v639_v52 }
 0x141   : > { %v700_v54 = vpop.f32.mrf.mxu3 }
 0x142   : > { %v672_v56 = vadd.f32 %v668_v50, %v653_v53 }
 0x143   : > { %v623_v57 = vpop.f32.mrf.mxu2  ;;  %v713_v58 = vpop.f32.mrf.mxu0 }
 0x144   : > { %v673_v59 = vadd.f32 %v1503_v51, %v672_v56 }
 0x145   : > { %v670_v60 = vpop.f32.mrf.mxu1 }
 0x146   : > { %v674_v62 = vmax.f32 %v673_v59, 0.0 }
 0x148   : > { %v675_v63 = vmax.f32 %v529_v61, %v674_v62 }
 0x149   : > { %v753_v0 = vpop.f32.mrf.mxu3 }
 0x14b   : > { %v685_v2 = vpop.f32.mrf.mxu2  ;;  %v780_v3 = vpop.f32.mrf.mxu0 }
 0x14c   : > { %v699_v5 = vadd.f32 %v698_v46, %v685_v2 }
 0x14d   : > { %v725_v6 = vpop.f32.mrf.mxu1 }
 0x14e   : > { %v715_v9 = vadd.f32 %v711_v48, %v699_v5 }
 0x150   : > { %v729_v15 = vadd.f32 %v725_v6, %v715_v9 }
 0x151   : > { %v755_v7 = vpop.f32.mrf.mxu3 }
 0x153   : > { %v687_v11 = vpop.f32.mrf.mxu2  ;;  %v782_v12 = vpop.f32.mrf.mxu0 }
 0x155   : > { %v727_v13 = vpop.f32.mrf.mxu1 }
 0x159   : > { %v843_v1 = vpop.f32.mrf.mxu3 }
 0x15b   : > { %v739_v4 = vpop.f32.mrf.mxu2  ;;  %v856_v14 = vpop.f32.mrf.mxu0 }
 0x15c   : > { %v743_v16 = vadd.f32 %v739_v4, %v729_v15  ;;  %v857_v36 = vadd.f32 %v856_v14, %v843_v1 }
 0x15d   : > { %v807_v8 = vpop.f32.mrf.mxu1 }
 0x15e   : > { %v757_v17 = vadd.f32 %v753_v0, %v743_v16 }
 0x160   : > { %v784_v21 = vadd.f32 %v780_v3, %v757_v17 }
 0x161   : > { %v845_v10 = vpop.f32.mrf.mxu3 }
 0x162   : > { %v811_v23 = vadd.f32 %v807_v8, %v784_v21 }
 0x163   : > { %v741_v18 = vpop.f32.mrf.mxu2  ;;  %v858_v19 = vpop.f32.mrf.mxu0 }
 0x165   : > { %v809_v20 = vpop.f32.mrf.mxu1 }
 0x169   : > { %v897_v22 = vpop.f32.mrf.mxu3 }
 0x16b   : > { %v826_v24 = vpop.f32.mrf.mxu2  ;;  %v911_v25 = vpop.f32.mrf.mxu0 }
 0x16c   : > { %v830_v26 = vadd.f32 %v826_v24, %v811_v23 }
 0x16d   : > { %v869_v27 = vpop.f32.mrf.mxu1 }
 0x16e   : > { %v831_v28 = vadd.f32 %v1503_v51, %v830_v26  ;;  %v873_v38 = vadd.f32 %v869_v27, %v857_v36 }
 0x170   : > { %v832_v29 = vmax.f32 %v831_v28, 0.0 }
 0x171   : > { %v899_v30 = vpop.f32.mrf.mxu3 }
 0x172   : > { %v833_v31 = vmax.f32 %v675_v63, %v832_v29 }
 0x173   : > { %v828_v32 = vpop.f32.mrf.mxu2  ;;  %v913_v33 = vpop.f32.mrf.mxu0 }
 0x175   : > { %v871_v34 = vpop.f32.mrf.mxu1 }
 0x179   : > { %v958_v35 = vpop.f32.mrf.mxu3 }
 0x17b   : > { %v883_v37 = vpop.f32.mrf.mxu2 }
 0x17c   : > { %v887_v40 = vadd.f32 %v883_v37, %v873_v38 }
 0x17d   : > { %v925_v39 = vpop.f32.mrf.mxu1 }
 0x17e   : > { %v901_v42 = vadd.f32 %v897_v22, %v887_v40 }
 0x180   : > { %v915_v45 = vadd.f32 %v911_v25, %v901_v42 }
 0x181   : > { %v960_v41 = vpop.f32.mrf.mxu3 }
 0x182   : > { %v929_v46 = vadd.f32 %v925_v39, %v915_v45 }
 0x183   : > { %v885_v43 = vpop.f32.mrf.mxu2 }
 0x185   : > { %v927_v44 = vpop.f32.mrf.mxu1 }
 0x18b   : > { %v939_v47 = vpop.f32.mrf.mxu2 }
 0x18c   : > { %v943_v48 = vadd.f32 %v939_v47, %v929_v46 }
 0x18e   : > { %v962_v49 = vadd.f32 %v958_v35, %v943_v48 }
 0x190   : > { %v963_v50 = vadd.f32 %v1503_v51, %v962_v49 }
 0x192   : > { %v964_v52 = vmax.f32 %v963_v50, 0.0 }
 0x193   : > { %v941_v53 = vpop.f32.mrf.mxu2 }
 0x194   : > { %v965_v54 = vmax.f32 %v833_v31, %v964_v52 }
 0x196   : > { %967 = vst.msk [vmem:[%s173_s9] sm:$0xff] %vm966_vm1, %v965_v54 }
 0x197 PF: > { %s13_s12 = sadd.s32 1, %s1213_s12  }
 0x198   : > { %p10_p5 = scmp.ge.s32.totalorder %s13_s12, 4  }
 0x19a   :  { %12 = sbr.rel (!%p10_p5) target bundleno = 1 (0x1), region = 73 }

// kernel: cnn_forward.4
= control target key start
LH: loop header
LB: loop body
LE: loop exit
PB: predicated region body
PF: predicated region fallthrough
CT: control target
= control target key end

     0   :  { %s1231_s12 = smov 0   ;;  %s1522_s0 = inlined_call_operand.vmem [shape: bf16[8,5,40], index: 0, kind: input, shape index: {}]   ;;  %s1523_s1 = inlined_call_operand.vmem [shape: bf16[9,32,64], index: 1, kind: input, shape index: {}]   ;;  %s1524_s2 = inlined_call_operand.vmem [shape: f32[1,64], index: 2, kind: input, shape index: {}]   ;;  %s1525_s3 = inlined_call_operand.vmem [shape: f32[2,4,64], index: 3, kind: output, shape index: {}]  }
   0x1 LB: > { %s1237_s13 = sadd.s32 4294967295, %s1208_s12   ;;  %p1022_p0 = scmp.ge.s32.totalorder %s1208_s12, 1  ;;  %s1208_s12 = sphi %s1231_s12, %s13_s12  }
   0x2   : > { %p138_p1 = scmp.lt.s32.totalorder %s1208_s12, 3 }
   0x4   : > { %p139_p2 = pnand %p1022_p0, %p138_p1 }
   0x5   : > { %s1023_s14 = sshll.u32 (!%p139_p2), %s1237_s13, 2  ;;  %s1210_s20 = smov (!%p139_p2), 120  }
   0x6   : > { %142 = sbr.rel (%p139_p2) target bundleno = 407 (0x197), region = 32  ;;  %p162_p3 = scmp.lt.s32.totalorder (!%p139_p2), %s1023_s14, 7 }
   0x7   : > { %p167_p4 = scmp.lt.s32.totalorder (!%p139_p2), %s1237_s13, 1 }
   0xb   : > { %v1245_v0 = vld [vmem:[%s1523_s1 + $0x18] sm:$0xff]  ;;  %v1255_v2 = vld [vmem:[%s1523_s1 + $0x8] sm:$0xff]  ;;  %v1261_v3 = vld [vmem:[%s1523_s1 + $0x10] sm:$0xff]  ;;  %s1527_s14 = smov (!%p162_p3, %s1023_s14), 7  ;;  %vm205_vm0 = vcmask 261120   ;;  %s1529_s13 = smov (!%p167_p4, %s1237_s13), 1 }
   0xc   : > { %v1250_v1 = vld [vmem:[%s1523_s1 + $0x38] sm:$0xff]  ;;  %215 = vmatpush.bf16.msra.mxu0 %v1245_v0  ;;  %v1267_v4 = vld [vmem:[%s1523_s1 + $0x30] sm:$0xff]  ;;  %v1272_v5 = vld [vmem:[%s1523_s1 + $0x48] sm:$0xff]  ;;  %243 = vmatpush.bf16.msra.mxu1 %v1255_v2  ;;  %s1024_s6 = sshll.u32 %s1527_s14, 2  ;;  %vm963_vm1 = vcmask 519168  }
   0xd   : > { %315 = vmatpush.bf16.msra.mxu3 %v1250_v1  ;;  %v1278_v6 = vld [vmem:[%s1523_s1] sm:$0xff]  ;;  %v1283_v7 = vld [vmem:[%s1523_s1 + $0x28] sm:$0xff]  ;;  %v1288_v8 = vld [vmem:[%s1523_s1 + $0x78] sm:$0xff]  ;;  %s1294_s9 = scalar_lea.vmem %s1522_s0, %s1024_s6  ;;  %s1025_s6 = sshll.u32 %s1529_s13, 2 }
   0xe   : > { %281 = vmatpush.bf16.msra.mxu2 %v1283_v7  ;;  %v1301_v9 = vld [vmem:[%s1523_s1 + $0x40] sm:$0xff]  ;;  %v1306_v10 = vld [vmem:[%s1523_s1 + $0x70] sm:$0xff]  ;;  %v1316_v14 = vld [vmem:[%s1294_s9 + $0x8] sm:$0x3] }
   0xf   : > { %v1311_v11 = vld [vmem:[%s1523_s1 + $0x20] sm:$0xff]  ;;  %v1324_v18 = vld [vmem:[%s1294_s9 + $0xc] sm:$0x3]  ;;  %v1029_v22 = vld [vmem:[%s1294_s9 + $0x8] sm:$0x7]  ;;  %v363_v31 = vunpack.c.l.b16 %v1316_v14 }
  0x10   : > { %216 = vmatpush.bf16.msra.mxu0 %v1261_v3  ;;  %v173_v12 = vld [vmem:[%s1294_s9] sm:$0x3]  ;;  %244 = vmatpush.bf16.msra.mxu1 %v1278_v6  ;;  %v1321_v17 = vld [vmem:[%s1294_s9 + $0x4] sm:$0x3]  ;;  %v602_v20 = vunpack.c.l.b16 %v1324_v18  ;;  %v1337_v23 = vld [vmem:[%s1523_s1 + $0x88] sm:$0xff]  ;;  %v756_v26 = vunpack.c.l.b16 %v1029_v22 }
  0x11   : > { %316 = vmatpush.bf16.msra.mxu3 %v1267_v4  ;;  %v174_v13 = vld [vmem:[%s1294_s9] sm:$0x7]  ;;  %v256_v15 = vunpack.c.l.b16 %v173_v12  ;;  %v1027_v19 = vld [vmem:[%s1294_s9 + $0x4] sm:$0x7]  ;;  %v364_v38 = vpack.c.b16 %v363_v31, %v363_v31  ;;  %v552_v41 = vunpack.c.l.b16 %v1321_v17  ;;  %v1031_v46 = vld [vmem:[%s1294_s9 + $0xc] sm:$0x7]  ;;  %s170_s9 = scalar_lea.vmem %s1525_s3, %s1025_s6 }
  0x12   : > { %v402_v16 = vunpack.c.l.b16 %v174_v13  ;;  %v446_v21 = vunpack.c.l.b16 %v1027_v19  ;;  %282 = vmatpush.bf16.msra.mxu2 %v1311_v11  ;;  %v603_v27 = vpack.c.b16 %v602_v20, %v602_v20  ;;  %v757_v32 = vpack.c.b16 %v756_v26, %v756_v26  ;;  %v1372_v48 = vld [vmem:[%s1523_s1 + $0x58] sm:$0xff]  ;;  %v1377_v50 = vld [vmem:[%s1523_s1 + $0x68] sm:$0xff]  ;;  %v1382_v51 = vld [vmem:[%s1523_s1 + $0x80] sm:$0xff] }
  0x13   : > { %1044 = vmatmul.msk.bf16.vlgmr.msra.gmra.mxu0 %vm205_vm0, %v1321_v17  ;;  %v257_v24 = vpack.c.b16 %v256_v15, %v256_v15  ;;  %1053 = vmatmul.msk.bf16.vlgmr.msra.gmra.mxu1 %vm205_vm0, %v173_v12  ;;  %v553_v44 = vpack.c.b16 %v552_v41, %v552_v41  ;;  %v783_v47 = vunpack.c.l.b16 %v1031_v46  ;;  %v1388_v52 = vld [vmem:[%s1523_s1 + $0x50] sm:$0xff]  ;;  %v1404_v57 = vld [vmem:[%s1523_s1 + $0x60] sm:$0xff] }
  0x14   : > { %349 = vmatpush.bf16.msrb.mxu0 %v1272_v5  ;;  %1079 = vmatmul.msk.bf16.vlgmr.msra.gmra.mxu3 %vm205_vm0, %v1316_v14  ;;  %v403_v25 = vpack.c.b16 %v402_v16, %v402_v16  ;;  %v447_v28 = vpack.c.b16 %v446_v21, %v446_v21  ;;  %v761_v39 = vshll.u32 %v757_v32, 16  ;;  %v759_v42 = vshrl.u32 %v757_v32, 16 }
  0x15   : > { %476 = vmatpush.bf16.msrb.mxu3 %v1288_v8  ;;  %258 = vrot.lane.b32.xlu0 %v257_v24, %s1210_s20  ;;  %v784_v49 = vpack.c.b16 %v783_v47, %v783_v47 }
  0x16   : > { %v405_v29 = vshrl.u32 %v403_v25, 16  ;;  %v407_v30 = vshll.u32 %v403_v25, 16  ;;  %604 = vrot.lane.b32.xlu2 %v603_v27, %s1210_s20  ;;  %v449_v33 = vshrl.u32 %v447_v28, 16  ;;  %v451_v34 = vshll.u32 %v447_v28, 16  ;;  %388 = vmatpush.bf16.msrb.mxu1 %v1372_v48 }
  0x17   : > { %v763_v43 = vrot.slane %v761_v39, 1  ;;  %v788_v53 = vshll.u32 %v784_v49, 16  ;;  %432 = vmatpush.bf16.msrb.mxu2 %v1377_v50  ;;  %v786_v54 = vshrl.u32 %v784_v49, 16 }
  0x18   : > { %350 = vmatpush.bf16.msrb.mxu0 %v1301_v9  ;;  %v409_v35 = vrot.slane %v407_v30, 1  ;;  %v453_v36 = vrot.slane %v451_v34, 1 }
  0x19   : > { %477 = vmatpush.bf16.msrb.mxu3 %v1306_v10  ;;  %v1359_v45 = vor.u32 %v763_v43, %v759_v42  ;;  %v790_v55 = vrot.slane %v788_v53, 1 }
  0x1a   : > { %v1348_v37 = vor.u32 %v409_v35, %v405_v29  ;;  %v1350_v40 = vor.u32 %v453_v36, %v449_v33  ;;  %389 = vmatpush.bf16.msrb.mxu1 %v1388_v52 }
  0x1b   : > { %v1395_v56 = vor.u32 %v790_v55, %v786_v54  ;;  %433 = vmatpush.bf16.msrb.mxu2 %v1404_v57 }
  0x1c   : > { %512 = vmatpush.bf16.msra.mxu0 %v1337_v23  ;;  %489 = vrot.lane.b32.xlu1 %v1348_v37, %s1210_s20 }
  0x1d   : > { %565 = vmatpush.bf16.msra.mxu3 %v1283_v7  ;;  %365 = vrot.lane.b32.xlu0 %v364_v38, %s1210_s20 }
  0x1e   : > { %651 = vrot.lane.b32.xlu2 %v1350_v40, %s1210_s20  ;;  %531 = vmatpush.bf16.msra.mxu1 %v1245_v0 }
  0x20   : > { %513 = vmatpush.bf16.msra.mxu0 %v1382_v51 }
  0x21   : > { %566 = vmatpush.bf16.msra.mxu3 %v1311_v11 }
  0x22   : > { %532 = vmatpush.bf16.msra.mxu1 %v1261_v3 }
  0x23   : > { %1092 = vmatmul.msk.bf16.vlgmr.msrb.gmra.mxu0 %vm205_vm0, %v1324_v18 }
  0x24   : > { %1131 = vmatmul.msk.bf16.vlgmr.msrb.gmra.mxu3 %vm205_vm0, %v1350_v40  ;;  %554 = vrot.lane.b32.xlu1 %v553_v44, %s1210_s20 }
  0x25   : > { %809 = vrot.lane.b32.xlu0 %v1359_v45, %s1210_s20  ;;  %579 = vmatpush.bf16.msrb.mxu0 %v1250_v1 }
  0x26   : > { %629 = vmatpush.bf16.msrb.mxu3 %v1377_v50 }
  0x29   : > { %580 = vmatpush.bf16.msrb.mxu0 %v1267_v4 }
  0x2a   : > { %630 = vmatpush.bf16.msrb.mxu3 %v1404_v57 }
  0x2c   : > { %941 = vrot.lane.b32.xlu1 %v1395_v56, %s1210_s20 }
  0x70   : > { %v605_v62 = vpop.permute.xlu2 %604 }
  0x78   : > { %v652_v63 = vpop.permute.xlu2 %651 }
  0x87   : > { %v259_v58 = vpop.permute.xlu0 %258 }
  0x88   : > { %1066 = vmatmul.msk.bf16.vlgmr.msra.gmra.mxu2 %vm205_vm0, %v259_v58 }
  0x89   : > { %544 = vmatpush.bf16.msra.mxu2 %v1255_v2 }
  0x8d   : > { %545 = vmatpush.bf16.msra.mxu2 %v1278_v6 }
  0x8e   : > { %v1411_v59 = vpop.permute.xlu1 %489 }
  0x8f   : > { %1144 = vmatmul.msk.bf16.vlgmr.msra.gmra.mxu0 %vm205_vm0, %v1411_v59  ;;  %v366_v60 = vpop.permute.xlu0 %365 }
  0x90   : > { %643 = vmatpush.bf16.msra.mxu0 %v1288_v8  ;;  %1105 = vmatmul.msk.bf16.vlgmr.msrb.gmra.mxu1 %vm205_vm0, %v366_v60 }
  0x91   : > { %593 = vmatpush.bf16.msrb.mxu1 %v1272_v5 }
  0x94   : > { %644 = vmatpush.bf16.msra.mxu0 %v1306_v10 }
  0x95   : > { %594 = vmatpush.bf16.msrb.mxu1 %v1301_v9 }
  0x96   : > { %v555_v61 = vpop.permute.xlu1 %554 }
  0x97   : > { %1147 = vmatmul.msk.bf16.vlgmr.msra.gmra.mxu3 %vm205_vm0, %v555_v61  ;;  %v810_v13 = vpop.permute.xlu0 %809 }
  0x98   : > { %692 = vmatpush.bf16.msra.mxu3 %v1255_v2  ;;  %1118 = vmatmul.msk.bf16.vlgmr.msrb.gmra.mxu2 %vm205_vm0, %v1348_v37 }
  0x99   : > { %615 = vmatpush.bf16.msrb.mxu2 %v1372_v48 }
  0x9c   : > { %693 = vmatpush.bf16.msra.mxu3 %v1278_v6 }
  0x9d   : > { %616 = vmatpush.bf16.msrb.mxu2 %v1388_v52 }
  0x9f   : > { %1148 = vmatmul.msk.bf16.vlgmr.msrb.gmra.mxu0 %vm205_vm0, %v1324_v18 }
  0xa0   : > { %705 = vmatpush.bf16.msrb.mxu0 %v1283_v7  ;;  %1145 = vmatmul.msk.bf16.vlgmr.msra.gmra.mxu1 %vm205_vm0, %v259_v58 }
  0xa1   : > { %662 = vmatpush.bf16.msra.mxu1 %v1337_v23 }
  0xa4   : > { %706 = vmatpush.bf16.msrb.mxu0 %v1311_v11 }
  0xa5   : > { %663 = vmatpush.bf16.msra.mxu1 %v1382_v51 }
  0xa7   : > { %1151 = vmatmul.msk.bf16.vlgmr.msrb.gmra.mxu3 %vm205_vm0, %v1350_v40 }
  0xa8   : > { %747 = vmatpush.bf16.msrb.mxu3 %v1372_v48  ;;  %1146 = vmatmul.msk.bf16.vlgmr.msra.gmra.mxu2 %vm205_vm0, %v1321_v17 }
  0xa9   : > { %679 = vmatpush.bf16.msra.mxu2 %v1245_v0 }
  0xac   : > { %748 = vmatpush.bf16.msrb.mxu3 %v1388_v52 }
  0xad   : > { %680 = vmatpush.bf16.msra.mxu2 %v1261_v3 }
  0xaf   : > { %1152 = vmatmul.msk.bf16.vlgmr.msra.gmra.mxu0 %vm205_vm0, %v1411_v59 }
  0xb0   : > { %774 = vmatpush.bf16.msra.mxu0 %v1377_v50  ;;  %1149 = vmatmul.msk.bf16.vlgmr.msrb.gmra.mxu1 %vm205_vm0, %v366_v60 }
  0xb1   : > { %719 = vmatpush.bf16.msrb.mxu1 %v1250_v1 }
  0xb4   : > { %775 = vmatpush.bf16.msra.mxu0 %v1404_v57 }
  0xb5   : > { %720 = vmatpush.bf16.msrb.mxu1 %v1267_v4 }
  0xb7   : > { %1155 = vmatmul.msk.bf16.vlgmr.msra.gmra.mxu3 %vm205_vm0, %v1316_v14  ;;  %v942_v14 = vpop.permute.xlu1 %941 }
  0xb8   : > { %837 = vmatpush.bf16.msra.mxu3 %v1245_v0  ;;  %1150 = vmatmul.msk.bf16.vlgmr.msrb.gmra.mxu2 %vm205_vm0, %v605_v62  ;;  %v218_v0 = vpop.f32.mrf.mxu0 }
  0xb9   : > { %733 = vmatpush.bf16.msrb.mxu2 %v1272_v5 }
  0xbc   : > { %838 = vmatpush.bf16.msra.mxu3 %v1261_v3  ;;  %v318_v3 = vpop.f32.mrf.mxu3 }
  0xbd   : > { %734 = vmatpush.bf16.msrb.mxu2 %v1301_v9 }
  0xbf   : > { %1156 = vmatmul.msk.bf16.vlgmr.msrb.gmra.mxu0 %vm205_vm0, %v366_v60 }
  0xc0   : > { %850 = vmatpush.bf16.msrb.mxu0 %v1255_v2  ;;  %1153 = vmatmul.msk.bf16.vlgmr.msra.gmra.mxu1 %vm205_vm0, %v652_v63  ;;  %v220_v2 = vpop.f32.mrf.mxu0 }
  0xc1   : > { %801 = vmatpush.bf16.msra.mxu1 %v1288_v8 }
  0xc4   : > { %851 = vmatpush.bf16.msrb.mxu0 %v1278_v6  ;;  %v246_v6 = vpop.f32.mrf.mxu1 }
  0xc5   : > { %802 = vmatpush.bf16.msra.mxu1 %v1306_v10 }
  0xc7   : > { %1159 = vmatmul.msk.bf16.vlgmr.msrb.gmra.mxu3 %vm205_vm0, %v1411_v59 }
  0xc8   : > { %891 = vmatpush.bf16.msrb.mxu3 %v1272_v5  ;;  %1154 = vmatmul.msk.bf16.vlgmr.msra.gmra.mxu2 %vm205_vm0, %v1324_v18  ;;  %v352_v5 = vpop.f32.mrf.mxu0 }
  0xc9   : > { %820 = vmatpush.bf16.msra.mxu2 %v1337_v23 }
  0xcc   : > { %892 = vmatpush.bf16.msrb.mxu3 %v1301_v9  ;;  %v247_v9 = vadd.f32 %v246_v6, %v218_v0  ;;  %v248_v12 = vpop.f32.mrf.mxu1 }
  0xcd   : > { %821 = vmatpush.bf16.msra.mxu2 %v1382_v51 }
  0xcf   : > { %1160 = vmatmul.msk.bf16.vlgmr.msra.gmra.mxu0 %vm205_vm0, %v1359_v45 }
  0xd0   : > { %905 = vmatpush.bf16.msra.mxu0 %v1372_v48  ;;  %1157 = vmatmul.msk.bf16.vlgmr.msrb.gmra.mxu1 %vm205_vm0, %v1348_v37 }
  0xd1   : > { %863 = vmatpush.bf16.msrb.mxu1 %v1283_v7  ;;  %v320_v7 = vpop.f32.mrf.mxu3 }
  0xd4   : > { %906 = vmatpush.bf16.msra.mxu0 %v1388_v52 }
  0xd5   : > { %864 = vmatpush.bf16.msrb.mxu1 %v1311_v11  ;;  %v354_v11 = vpop.f32.mrf.mxu0 }
  0xd7   : > { %1163 = vmatmul.msk.bf16.vlgmr.msra.gmra.mxu3 %vm205_vm0, %v366_v60 }
  0xd8   : > { %952 = vmatpush.bf16.msra.mxu3 %v1337_v23  ;;  %1158 = vmatmul.msk.bf16.vlgmr.msrb.gmra.mxu2 %vm205_vm0, %v1350_v40 }
  0xd9   : > { %877 = vmatpush.bf16.msrb.mxu2 %v1250_v1  ;;  %v479_v1 = vpop.f32.mrf.mxu3 }
  0xdc   : > { %953 = vmatpush.bf16.msra.mxu3 %v1382_v51  ;;  %v1508_v51 = vld [vmem:[%s1524_s2] ss:$0 sm:$0xff] }
  0xdd   : > { %878 = vmatpush.bf16.msrb.mxu2 %v1267_v4 }
  0xdf   : > { %1164 = vmatmul.msk.bf16.vlgmr.msrb.gmra.mxu0 %vm205_vm0, %v1324_v18 }
  0xe0   : > { %1161 = vmatmul.msk.bf16.vlgmr.msra.gmra.mxu1 %vm205_vm0, %v1395_v56 }
  0xe1   : > { %919 = vmatpush.bf16.msra.mxu1 %v1377_v50  ;;  %v481_v4 = vpop.f32.mrf.mxu3 }
  0xe5   : > { %920 = vmatpush.bf16.msra.mxu1 %v1404_v57 }
  0xe7   : > { %1167 = vmatmul.msk.bf16.vlgmr.msrb.gmra.mxu3 %vm205_vm0, %v1411_v59 }
  0xe8   : > { %1162 = vmatmul.msk.bf16.vlgmr.msra.gmra.mxu2 %vm205_vm0, %v810_v13 }
  0xe9   : > { %933 = vmatpush.bf16.msra.mxu2 %v1288_v8 }
  0xed   : > { %934 = vmatpush.bf16.msra.mxu2 %v1306_v10 }
  0xef   : > { %1168 = vmatmul.msk.bf16.vlgmr.msra.gmra.mxu0 %vm205_vm0, %v652_v63 }
  0xf0   : > { %1165 = vmatmul.msk.bf16.vlgmr.msrb.gmra.mxu1 %vm205_vm0, %v605_v62 }
  0xf7   : > { %1171 = vmatmul.msk.bf16.vlgmr.msra.gmra.mxu3 %vm205_vm0, %v942_v14 }
  0xf8   : > { %1166 = vmatmul.msk.bf16.vlgmr.msrb.gmra.mxu2 %vm205_vm0, %v1350_v40 }
 0x100   : > { %1169 = vmatmul.msk.bf16.vlgmr.msra.gmra.mxu1 %vm205_vm0, %v1395_v56 }
 0x108   : > { %1170 = vmatmul.msk.bf16.vlgmr.msra.gmra.mxu2 %vm205_vm0, %v810_v13 }
 0x10b   : > { %v284_v15 = vpop.f32.mrf.mxu2 }
 0x10c   : > { %v515_v8 = vpop.f32.mrf.mxu0  ;;  %v288_v16 = vadd.f32 %v284_v15, %v247_v9 }
 0x10d   : > { %v391_v10 = vpop.f32.mrf.mxu1 }
 0x10e   : > { %v322_v17 = vadd.f32 %v318_v3, %v288_v16 }
 0x110   : > { %v356_v18 = vadd.f32 %v352_v5, %v322_v17 }
 0x112   : > { %v395_v19 = vadd.f32 %v391_v10, %v356_v18 }
 0x113   : > { %v286_v20 = vpop.f32.mrf.mxu2 }
 0x114   : > { %v517_v21 = vpop.f32.mrf.mxu0 }
 0x115   : > { %v393_v22 = vpop.f32.mrf.mxu1 }
 0x11a   : > { %v568_v23 = vpop.f32.mrf.mxu3 }
 0x11b   : > { %v435_v24 = vpop.f32.mrf.mxu2 }
 0x11c   : > { %v582_v25 = vpop.f32.mrf.mxu0  ;;  %v439_v26 = vadd.f32 %v435_v24, %v395_v19 }
 0x11d   : > { %v534_v27 = vpop.f32.mrf.mxu1 }
 0x11e   : > { %v483_v28 = vadd.f32 %v479_v1, %v439_v26 }
 0x120   : > { %v519_v29 = vadd.f32 %v515_v8, %v483_v28 }
 0x122   : > { %v570_v30 = vpop.f32.mrf.mxu3  ;;  %v523_v55 = vadd.f32 %v1508_v51, %v519_v29 }
 0x123   : > { %v437_v31 = vpop.f32.mrf.mxu2 }
 0x124   : > { %v584_v32 = vpop.f32.mrf.mxu0  ;;  %v524_v61 = vmax.f32 %v523_v55, 0.0 }
 0x125   : > { %v536_v33 = vpop.f32.mrf.mxu1 }
 0x12a   : > { %v632_v34 = vpop.f32.mrf.mxu3 }
 0x12b   : > { %v547_v35 = vpop.f32.mrf.mxu2 }
 0x12c   : > { %v646_v36 = vpop.f32.mrf.mxu0  ;;  %v548_v37 = vadd.f32 %v547_v35, %v534_v27 }
 0x12d   : > { %v596_v38 = vpop.f32.mrf.mxu1 }
 0x12e   : > { %v572_v39 = vadd.f32 %v568_v23, %v548_v37 }
 0x130   : > { %v586_v40 = vadd.f32 %v582_v25, %v572_v39 }
 0x132   : > { %v634_v41 = vpop.f32.mrf.mxu3  ;;  %v600_v42 = vadd.f32 %v596_v38, %v586_v40 }
 0x133   : > { %v549_v43 = vpop.f32.mrf.mxu2 }
 0x134   : > { %v648_v44 = vpop.f32.mrf.mxu0 }
 0x135   : > { %v598_v45 = vpop.f32.mrf.mxu1 }
 0x13a   : > { %v695_v46 = vpop.f32.mrf.mxu3 }
 0x13b   : > { %v618_v47 = vpop.f32.mrf.mxu2 }
 0x13c   : > { %v708_v48 = vpop.f32.mrf.mxu0  ;;  %v622_v49 = vadd.f32 %v618_v47, %v600_v42 }
 0x13d   : > { %v665_v50 = vpop.f32.mrf.mxu1 }
 0x13e   : > { %v636_v52 = vadd.f32 %v632_v34, %v622_v49 }
 0x140   : > { %v650_v53 = vadd.f32 %v646_v36, %v636_v52 }
 0x142   : > { %v697_v54 = vpop.f32.mrf.mxu3  ;;  %v669_v56 = vadd.f32 %v665_v50, %v650_v53 }
 0x143   : > { %v620_v57 = vpop.f32.mrf.mxu2 }
 0x144   : > { %v710_v58 = vpop.f32.mrf.mxu0  ;;  %v670_v59 = vadd.f32 %v1508_v51, %v669_v56 }
 0x145   : > { %v667_v60 = vpop.f32.mrf.mxu1 }
 0x146   : > { %v671_v62 = vmax.f32 %v670_v59, 0.0 }
 0x148   : > { %v672_v63 = vmax.f32 %v524_v61, %v671_v62 }
 0x14a   : > { %v750_v0 = vpop.f32.mrf.mxu3 }
 0x14b   : > { %v682_v2 = vpop.f32.mrf.mxu2 }
 0x14c   : > { %v777_v3 = vpop.f32.mrf.mxu0  ;;  %v696_v5 = vadd.f32 %v695_v46, %v682_v2 }
 0x14d   : > { %v722_v6 = vpop.f32.mrf.mxu1 }
 0x14e   : > { %v712_v9 = vadd.f32 %v708_v48, %v696_v5 }
 0x150   : > { %v726_v15 = vadd.f32 %v722_v6, %v712_v9 }
 0x152   : > { %v752_v7 = vpop.f32.mrf.mxu3 }
 0x153   : > { %v684_v11 = vpop.f32.mrf.mxu2 }
 0x154   : > { %v779_v12 = vpop.f32.mrf.mxu0 }
 0x155   : > { %v724_v13 = vpop.f32.mrf.mxu1 }
 0x15a   : > { %v840_v1 = vpop.f32.mrf.mxu3 }
 0x15b   : > { %v736_v4 = vpop.f32.mrf.mxu2 }
 0x15c   : > { %v853_v14 = vpop.f32.mrf.mxu0  ;;  %v740_v16 = vadd.f32 %v736_v4, %v726_v15 }
 0x15d   : > { %v804_v8 = vpop.f32.mrf.mxu1  ;;  %v854_v36 = vadd.f32 %v853_v14, %v840_v1 }
 0x15e   : > { %v754_v17 = vadd.f32 %v750_v0, %v740_v16 }
 0x160   : > { %v781_v21 = vadd.f32 %v777_v3, %v754_v17 }
 0x162   : > { %v842_v10 = vpop.f32.mrf.mxu3  ;;  %v808_v23 = vadd.f32 %v804_v8, %v781_v21 }
 0x163   : > { %v738_v18 = vpop.f32.mrf.mxu2 }
 0x164   : > { %v855_v19 = vpop.f32.mrf.mxu0 }
 0x165   : > { %v806_v20 = vpop.f32.mrf.mxu1 }
 0x16a   : > { %v894_v22 = vpop.f32.mrf.mxu3 }
 0x16b   : > { %v823_v24 = vpop.f32.mrf.mxu2 }
 0x16c   : > { %v908_v25 = vpop.f32.mrf.mxu0  ;;  %v827_v26 = vadd.f32 %v823_v24, %v808_v23 }
 0x16d   : > { %v866_v27 = vpop.f32.mrf.mxu1 }
 0x16e   : > { %v828_v28 = vadd.f32 %v1508_v51, %v827_v26  ;;  %v870_v38 = vadd.f32 %v866_v27, %v854_v36 }
 0x170   : > { %v829_v29 = vmax.f32 %v828_v28, 0.0 }
 0x172   : > { %v896_v30 = vpop.f32.mrf.mxu3  ;;  %v830_v31 = vmax.f32 %v672_v63, %v829_v29 }
 0x173   : > { %v825_v32 = vpop.f32.mrf.mxu2 }
 0x174   : > { %v910_v33 = vpop.f32.mrf.mxu0 }
 0x175   : > { %v868_v34 = vpop.f32.mrf.mxu1 }
 0x17a   : > { %v955_v35 = vpop.f32.mrf.mxu3 }
 0x17b   : > { %v880_v37 = vpop.f32.mrf.mxu2 }
 0x17c   : > { %v884_v40 = vadd.f32 %v880_v37, %v870_v38 }
 0x17d   : > { %v922_v39 = vpop.f32.mrf.mxu1 }
 0x17e   : > { %v898_v42 = vadd.f32 %v894_v22, %v884_v40 }
 0x180   : > { %v912_v45 = vadd.f32 %v908_v25, %v898_v42 }
 0x182   : > { %v957_v41 = vpop.f32.mrf.mxu3  ;;  %v926_v46 = vadd.f32 %v922_v39, %v912_v45 }
 0x183   : > { %v882_v43 = vpop.f32.mrf.mxu2 }
 0x185   : > { %v924_v44 = vpop.f32.mrf.mxu1 }
 0x18b   : > { %v936_v47 = vpop.f32.mrf.mxu2 }
 0x18c   : > { %v940_v48 = vadd.f32 %v936_v47, %v926_v46 }
 0x18e   : > { %v959_v49 = vadd.f32 %v955_v35, %v940_v48 }
 0x190   : > { %v960_v50 = vadd.f32 %v1508_v51, %v959_v49 }
 0x192   : > { %v961_v52 = vmax.f32 %v960_v50, 0.0 }
 0x193   : > { %v938_v53 = vpop.f32.mrf.mxu2 }
 0x194   : > { %v962_v54 = vmax.f32 %v830_v31, %v961_v52 }
 0x196   : > { %964 = vst.msk [vmem:[%s170_s9] sm:$0xf] %vm963_vm1, %v962_v54 }
 0x197 PF: > { %s13_s12 = sadd.s32 1, %s1208_s12  }
 0x198   : > { %p10_p5 = scmp.ge.s32.totalorder %s13_s12, 4  }
 0x19a   :  { %12 = sbr.rel (!%p10_p5) target bundleno = 1 (0x1), region = 73 }

</bundles_post_ra>
